<compile_context>
chip_gen: v5e
topology: v5e:2x2
jax: 0.10.0
libtpu: 0.0.40
codegen_flags: <defaults>
</compile_context>

<pallas_src>
import functools
import math

import jax
import jax.numpy as jnp
from jax.experimental import pallas as pl
from jax.experimental.pallas import tpu as pltpu


# ----------------------------- helpers --------------------------------------

_VMEM_LIMIT = 48 * 1024 * 1024  # fits v7x (64 MiB) with headroom; generous on v5e/v6e


def _compiler_params(semantics):
    return pltpu.CompilerParams(dimension_semantics=semantics,
                                vmem_limit_bytes=_VMEM_LIMIT)


def _tile_and_pad(dim, target):
    """Pick a tile size and padded extent: whole axis when small, else pad to a tile multiple."""
    if dim <= target:
        return dim, dim
    padded = ((dim + target - 1) // target) * target
    return target, padded


def _pad_to(a, shape):
    pads = [(0, s - d) for d, s in zip(a.shape, shape)]
    if all(p == (0, 0) for p in pads):
        return a
    return jnp.pad(a, pads)


# ----------------------------- Pallas kernels ------------------------------


def _norm_matmul_kernel(x_ref, nw_ref, w_ref, b_ref, o_ref, xn_sc, *,
                        eps, inv_k, activation):
    """o = act(rmsnorm(x) @ w + b).  The normalized x tile is computed once per row
    block (j == 0) in fp32 and cached in VMEM (bf16) for all N tiles."""
    @pl.when(pl.program_id(1) == 0)
    def _():
        x = x_ref[...].astype(jnp.float32)
        # sum * 1/true_K (not mean): exact even when K rows are zero-padded.
        ms = jnp.sum(x * x, axis=-1, keepdims=True) * inv_k
        xn = x * jax.lax.rsqrt(ms + eps) * nw_ref[...].astype(jnp.float32)
        xn_sc[...] = xn.astype(xn_sc.dtype)

    acc = jnp.dot(xn_sc[...], w_ref[...], preferred_element_type=jnp.float32)
    acc = acc + b_ref[...].astype(jnp.float32)
    if activation == "gelu":
        # TODO(synk): PyTorch nn.GELU defaults to exact erf; reference DecoderLayer
        # internals are unknown, tanh approximation kept from the validated version.
        acc = jax.nn.gelu(acc, approximate=True)
    o_ref[...] = acc.astype(o_ref.dtype)


def _matmul_kernel(x_ref, w_ref, b_ref, o_ref, acc_ref, *, activation):
    """Tiled o = act(x @ w + b) with fp32 VMEM accumulator over the K grid axis."""
    @pl.when(pl.program_id(2) == 0)
    def _():
        acc_ref[...] = jnp.zeros_like(acc_ref)

    acc_ref[...] += jnp.dot(x_ref[...], w_ref[...], preferred_element_type=jnp.float32)

    @pl.when(pl.program_id(2) == pl.num_programs(2) - 1)
    def _():
        r = acc_ref[...] + b_ref[...].astype(jnp.float32)
        if activation == "gelu":
            r = jax.nn.gelu(r, approximate=True)
        o_ref[...] = r.astype(o_ref.dtype)


def _matmul_res_kernel(x_ref, w_ref, b_ref, res_ref, o_ref, acc_ref, *, activation):
    """Same as _matmul_kernel but with a fused residual add at finalize (output
    buffer aliases the residual input in HBM)."""
    @pl.when(pl.program_id(2) == 0)
    def _():
        acc_ref[...] = jnp.zeros_like(acc_ref)

    acc_ref[...] += jnp.dot(x_ref[...], w_ref[...], preferred_element_type=jnp.float32)

    @pl.when(pl.program_id(2) == pl.num_programs(2) - 1)
    def _():
        r = acc_ref[...] + b_ref[...].astype(jnp.float32)
        if activation == "gelu":
            r = jax.nn.gelu(r, approximate=True)
        r = r + res_ref[...].astype(jnp.float32)
        o_ref[...] = r.astype(o_ref.dtype)


def _flash_kernel(q_ref, k_ref, v_ref, o_ref, m_sc, l_sc, acc_sc, *, scale, tq, tk):
    """Causal flash attention with online softmax.  Blocks are (G heads, tile, dh);
    kv tiles above the diagonal are skipped (their DMA is already elided by the
    clamped index_map) and the causal mask is only built on the diagonal tile."""
    qi = pl.program_id(1)
    ki = pl.program_id(2)

    @pl.when(ki == 0)
    def _():
        m_sc[...] = jnp.full_like(m_sc, -jnp.inf)
        l_sc[...] = jnp.zeros_like(l_sc)
        acc_sc[...] = jnp.zeros_like(acc_sc)

    def step(masked):
        s = jnp.einsum("gqd,gkd->gqk", q_ref[...], k_ref[...],
                       preferred_element_type=jnp.float32) * scale
        if masked:
            rows = qi * tq + jax.lax.broadcasted_iota(jnp.int32, (tq, tk), 0)
            cols = ki * tk + jax.lax.broadcasted_iota(jnp.int32, (tq, tk), 1)
            s = jnp.where((rows >= cols)[None, :, :], s, -1e30)
        m_prev = m_sc[...]
        m_new = jnp.maximum(m_prev, s.max(axis=-1, keepdims=True))
        alpha = jnp.exp(m_prev - m_new)
        p = jnp.exp(s - m_new)
        l_sc[...] = alpha * l_sc[...] + p.sum(axis=-1, keepdims=True)
        acc_sc[...] = alpha * acc_sc[...] + jnp.einsum(
            "gqk,gkd->gqd", p.astype(v_ref.dtype), v_ref[...],
            preferred_element_type=jnp.float32)
        m_sc[...] = m_new

    # Interior tiles strictly below the diagonal: no mask work at all.
    @pl.when(ki < qi)
    def _():
        step(masked=False)

    # Diagonal-straddling tile (tq == tk => ki == qi): apply the causal mask.
    # ki == 0 is always processed (ki <= qi), so m/l are finite before finalize.
    @pl.when(ki == qi)
    def _():
        step(masked=True)

    @pl.when(ki == pl.num_programs(2) - 1)
    def _():
        o_ref[...] = (acc_sc[...] *
                      pl.reciprocal(l_sc[...], approx=True)).astype(o_ref.dtype)


# ----------------------------- kernel wrappers ------------------------------


def norm_matmul(x2d, norm_w, w, b, *, eps, activation=None, out_dtype=None,
                tm=256, tn=512):
    """Fused RMSNorm + matmul (+ optional GELU).  K stays un-tiled (the norm needs
    the full row); M and N are padded to tile multiples when non-divisible."""
    m, kdim = x2d.shape
    _, n = w.shape
    out_dtype = out_dtype or x2d.dtype
    tm, m_pad = _tile_and_pad(m, tm)
    tn, n_pad = _tile_and_pad(n, tn)

    x_p = _pad_to(x2d, (m_pad, kdim))
    w_p = _pad_to(w, (kdim, n_pad))
    b_p = _pad_to(b.reshape(1, n), (1, n_pad))

    out = pl.pallas_call(
        functools.partial(_norm_matmul_kernel, eps=eps, inv_k=1.0 / kdim,
                          activation=activation),
        out_shape=jax.ShapeDtypeStruct((m_pad, n_pad), out_dtype),
        grid=(m_pad // tm, n_pad // tn),
        in_specs=[
            pl.BlockSpec((tm, kdim), lambda i, j: (i, 0)),
            pl.BlockSpec((1, kdim), lambda i, j: (0, 0)),
            pl.BlockSpec((kdim, tn), lambda i, j: (0, j)),
            pl.BlockSpec((1, tn), lambda i, j: (0, j)),
        ],
        out_specs=pl.BlockSpec((tm, tn), lambda i, j: (i, j)),
        scratch_shapes=[pltpu.VMEM((tm, kdim), w.dtype)],   # cached normalized x tile
        # j must run 0..nj-1 in order within each i (norm cached at j == 0).
        compiler_params=_compiler_params(("parallel", "arbitrary")),
    )(x_p, norm_w.reshape(1, kdim), w_p, b_p)
    if (m_pad, n_pad) != (m, n):
        out = out[:m, :n]
    return out


def matmul(x2d, w, b, *, residual=None, activation=None, out_dtype=None,
           tm=256, tn=512, tk=512):
    """Tiled matmul with fp32 accumulator scratch; optional fused residual (written
    in place via input_output_aliases) and activation.  Pads M/N/K to tile multiples."""
    m, kdim = x2d.shape
    _, n = w.shape
    out_dtype = out_dtype or x2d.dtype
    tm, m_pad = _tile_and_pad(m, tm)
    tn, n_pad = _tile_and_pad(n, tn)
    tk, k_pad = _tile_and_pad(kdim, tk)

    x_p = _pad_to(x2d, (m_pad, k_pad))
    w_p = _pad_to(w, (k_pad, n_pad))
    b_p = _pad_to(b.reshape(1, n), (1, n_pad))

    in_specs = [
        pl.BlockSpec((tm, tk), lambda i, j, k: (i, k)),
        pl.BlockSpec((tk, tn), lambda i, j, k: (k, j)),
        pl.BlockSpec((1, tn), lambda i, j, k: (0, j)),
    ]
    args = [x_p, w_p, b_p]
    io_aliases = {}
    if residual is not None:
        res_p = _pad_to(residual.astype(out_dtype), (m_pad, n_pad))
        in_specs.append(pl.BlockSpec((tm, tn), lambda i, j, k: (i, j)))
        args.append(res_p)
        io_aliases = {3: 0}          # output written in place over the residual buffer
        kern = functools.partial(_matmul_res_kernel, activation=activation)
    else:
        kern = functools.partial(_matmul_kernel, activation=activation)

    out = pl.pallas_call(
        kern,
        out_shape=jax.ShapeDtypeStruct((m_pad, n_pad), out_dtype),
        grid=(m_pad // tm, n_pad // tn, k_pad // tk),
        in_specs=in_specs,
        out_specs=pl.BlockSpec((tm, tn), lambda i, j, k: (i, j)),
        scratch_shapes=[pltpu.VMEM((tm, tn), jnp.float32)],
        input_output_aliases=io_aliases,
        compiler_params=_compiler_params(("parallel", "parallel", "arbitrary")),
    )(*args)
    if (m_pad, n_pad) != (m, n):
        out = out[:m, :n]
    return out


def flash_attention(q, k, v, *, t_tile=128, g_target=8):
    """Causal flash attention over (B*H, T, dh):
       grid = (head blocks of G heads, q tiles, kv tiles); K/V index_map clamped to
       the causal limit so skipped kv tiles cost no DMA.
       TODO(synk): for tiny head_dim (8 lanes of 128) the P@V matmul / output stores
       are not lane-dense; block-diagonal head packing not implemented (production
       head dims of 64/128 are already dense)."""
    bh, t, dh = q.shape
    scale = 1.0 / math.sqrt(dh)
    tile, t_pad = _tile_and_pad(t, t_tile)     # tq == tk
    g = math.gcd(bh, g_target)                 # heads per block (divisor of B*H)

    q_p = _pad_to(q, (bh, t_pad, dh))
    k_p = _pad_to(k, (bh, t_pad, dh))
    v_p = _pad_to(v, (bh, t_pad, dh))
    nt = t_pad // tile

    out = pl.pallas_call(
        functools.partial(_flash_kernel, scale=scale, tq=tile, tk=tile),
        out_shape=jax.ShapeDtypeStruct((bh, t_pad, dh), q.dtype),
        grid=(bh // g, nt, nt),
        in_specs=[
            pl.BlockSpec((g, tile, dh), lambda b, qi, ki: (b, qi, 0)),
            pl.BlockSpec((g, tile, dh), lambda b, qi, ki: (b, jnp.minimum(ki, qi), 0)),
            pl.BlockSpec((g, tile, dh), lambda b, qi, ki: (b, jnp.minimum(ki, qi), 0)),
        ],
        out_specs=pl.BlockSpec((g, tile, dh), lambda b, qi, ki: (b, qi, 0)),
        scratch_shapes=[
            pltpu.VMEM((g, tile, 1), jnp.float32),    # running max m
            pltpu.VMEM((g, tile, 1), jnp.float32),    # running sum l
            pltpu.VMEM((g, tile, dh), jnp.float32),   # output accumulator
        ],
        compiler_params=_compiler_params(("parallel", "parallel", "arbitrary")),
    )(q_p, k_p, v_p)
    if t_pad != t:
        out = out[:, :t, :]
    return out


# ----------------------------- model (glue) ---------------------------------


def rope_tables(max_seq_len, head_dim, dtype=jnp.float32):
    inv_freq = 1.0 / (10000.0 ** (jnp.arange(0, head_dim, 2, dtype=jnp.float32) / head_dim))
    pos = jnp.arange(max_seq_len, dtype=jnp.float32)
    freqs = jnp.outer(pos, inv_freq)                       # (S, Dh/2)
    emb = jnp.concatenate([freqs, freqs], axis=-1)         # (S, Dh)
    return jnp.cos(emb).astype(dtype), jnp.sin(emb).astype(dtype)


def _rotate_half(x):
    d = x.shape[-1] // 2
    return jnp.concatenate([-x[..., d:], x[..., :d]], axis=-1)


def apply_rope(x, cos, sin):
    # x: (B*H, T, Dh); cos/sin: (T, Dh)
    return x * cos[None] + _rotate_half(x) * sin[None]


def decoder_layer(p, x, cfg):
    B, T, C = x.shape
    nh = cfg["n_head"]
    dh = C // nh
    eps = cfg["norm_eps"]
    x2d = x.reshape(B * T, C)

    # ---- attention sub-block: fused RMSNorm + QKV projection (bf16 MXU operands) ----
    qkv = norm_matmul(x2d, p["attn_norm_w"], p["wqkv"], p["bqkv"], eps=eps)  # (B*T, 3C)
    # TODO(synk): head-major reshape/transpose + RoPE below remain XLA glue; fusing
    # them into the QKV epilogue / flash prologue needs sub-128-lane head-column
    # blocks that Mosaic tiling restricts.
    qkv = qkv.reshape(B, T, 3, nh, dh).transpose(2, 0, 3, 1, 4)              # (3,B,nh,T,dh)
    q = qkv[0].reshape(B * nh, T, dh)
    k = qkv[1].reshape(B * nh, T, dh)
    v = qkv[2].reshape(B * nh, T, dh)

    cos, sin = cfg["rope_cos"][:T], cfg["rope_sin"][:T]
    q = apply_rope(q.astype(jnp.float32), cos, sin).astype(x.dtype)
    k = apply_rope(k.astype(jnp.float32), cos, sin).astype(x.dtype)

    attn = flash_attention(q, k, v)                                          # (B*nh, T, dh)
    attn = attn.reshape(B, nh, T, dh).transpose(0, 2, 1, 3).reshape(B * T, C)

    # fused output projection + residual add (in place over the residual buffer)
    x2d = matmul(attn, p["wo"], p["bo"], residual=x2d)

    # ---- MLP sub-block: fused RMSNorm + up-proj + GELU, then down-proj + residual ----
    ff = norm_matmul(x2d, p["mlp_norm_w"], p["w1"], p["b1"], eps=eps, activation="gelu")
    x2d = matmul(ff, p["w2"], p["b2"], residual=x2d)
    return x2d.reshape(B, T, C)


def model_forward(params, tokens, cfg):
    B, T = tokens.shape
    C = cfg["n_embd"]
    # token embedding lookup (gather) stays in plain JAX glue
    x = jnp.take(params["tok_embedding"], tokens, axis=0)        # (B, T, C) bf16
    for layer_params in params["layers"]:
        x = decoder_layer(layer_params, x, cfg)
    # fused final RMSNorm + lm_head; logits emitted in fp32
    logits = norm_matmul(x.reshape(B * T, C), params["norm_w"],
                         params["lm_head_w"], params["lm_head_b"],
                         eps=cfg["norm_eps"], out_dtype=jnp.float32)
    return logits.reshape(B, T, cfg["vocab_size"])


# ----------------------------- param init -----------------------------------


def init_params(key, cfg):
    C = cfg["n_embd"]
    V = cfg["vocab_size"]
    hidden = 4 * C
    wdtype = jnp.bfloat16   # MXU operands in bf16; fp32 accumulation inside kernels

    def dense(k, fan_in, fan_out):
        return (jax.random.normal(k, (fan_in, fan_out), jnp.float32) * 0.02).astype(wdtype)

    keys = jax.random.split(key, 2 + 4 * cfg["n_layers"])
    it = iter(keys)

    params = {
        "tok_embedding": (jax.random.normal(next(it), (V, C), jnp.float32) * 0.02).astype(wdtype),
        "norm_w": jnp.ones((C,), jnp.float32),
        "lm_head_w": dense(next(it), C, V),
        "lm_head_b": jnp.zeros((V,), jnp.float32),
        "layers": [],
    }
    for _ in range(cfg["n_layers"]):
        params["layers"].append({
            "attn_norm_w": jnp.ones((C,), jnp.float32),
            "wqkv": dense(next(it), C, 3 * C),
            "bqkv": jnp.zeros((3 * C,), jnp.float32),
            "wo": dense(next(it), C, C),
            "bo": jnp.zeros((C,), jnp.float32),
            "mlp_norm_w": jnp.ones((C,), jnp.float32),
            "w1": dense(next(it), C, hidden),
            "b1": jnp.zeros((hidden,), jnp.float32),
            "w2": dense(next(it), hidden, C),
            "b2": jnp.zeros((C,), jnp.float32),
        })
    return params


# ----------------------------- main ------------------------------------------


if __name__ == "__main__":
    # ModelConfig-equivalent small settings
    cfg = {
        "n_embd": 32,
        "n_head": 4,
        "n_layers": 2,
        "context_len": 8,
        "norm_eps": 1e-5,
        "vocab_size": 64,
        "dropout": 0.0,   # eval mode: dropout is a no-op
    }
    max_seq_len = cfg["context_len"] * 2
    head_dim = cfg["n_embd"] // cfg["n_head"]
    cos, sin = rope_tables(max_seq_len, head_dim)
    cfg["rope_cos"], cfg["rope_sin"] = cos, sin

    key = jax.random.PRNGKey(0)
    k_params, k_tokens = jax.random.split(key)
    params = init_params(k_params, cfg)

    B, T = 2, cfg["context_len"]
    tokens = jax.random.randint(k_tokens, (B, T), 0, cfg["vocab_size"], dtype=jnp.int32)

    fwd = jax.jit(functools.partial(model_forward, cfg=cfg))
    logits = fwd(params, tokens)
    jax.block_until_ready(logits)
    assert logits.shape == (B, T, cfg["vocab_size"]), logits.shape
    assert bool(jnp.all(jnp.isfinite(logits)))
    print("KERNEL_OK")
</pallas_src>

<mosaic_0001>
module attributes {stable_mosaic.version = 11 : i64} {
  func.func @_norm_matmul_kernel(%arg0: i32, %arg1: i32, %arg2: memref<16x32xbf16, #tpu.memory_space<vmem>>, %arg3: memref<1x32xf32, #tpu.memory_space<vmem>>, %arg4: memref<32x96xbf16, #tpu.memory_space<vmem>>, %arg5: memref<1x96xf32, #tpu.memory_space<vmem>>, %arg6: memref<16x96xbf16, #tpu.memory_space<vmem>>, %arg7: memref<16x32xbf16, #tpu.memory_space<vmem>>) attributes {dimension_semantics = [#tpu.dimension_semantics<parallel>, #tpu.dimension_semantics<arbitrary>], iteration_bounds = array<i64: 1, 1>, scalar_prefetch = 0 : i64, scratch_operands = 1 : i64, tpu.core_type = #tpu.core_type<tc>, window_params = [{transform_indices = @transform_0, window_bounds = array<i64: 16, 32>}, {pipeline_mode = #tpu.pipeline_mode<synchronous>, transform_indices = @transform_1, window_bounds = array<i64: 1, 32>}, {transform_indices = @transform_2, window_bounds = array<i64: 32, 96>}, {transform_indices = @transform_3, window_bounds = array<i64: 1, 96>}, {transform_indices = @transform_4, window_bounds = array<i64: 16, 96>}]} {
    %c0_i32 = arith.constant 0 : i32
    %0 = arith.cmpi eq, %arg1, %c0_i32 : i32
    %1 = arith.extui %0 : i1 to i32
    %c0_i32_0 = arith.constant 0 : i32
    %2 = arith.cmpi ne, %1, %c0_i32_0 : i32
    scf.if %2 {
      %c0_8 = arith.constant 0 : index
      %c0_9 = arith.constant 0 : index
      %11 = vector.load %arg2[%c0_8, %c0_9] : memref<16x32xbf16, #tpu.memory_space<vmem>>, vector<16x32xbf16>
      %12 = arith.extf %11 : vector<16x32xbf16> to vector<16x32xf32>
      %13 = arith.mulf %12, %12 : vector<16x32xf32>
      %cst_10 = arith.constant dense<0.000000e+00> : vector<16xf32>
      %14 = vector.multi_reduction <add>, %13, %cst_10 [1] : vector<16x32xf32> to vector<16xf32>
      %15 = vector.shape_cast %14 : vector<16xf32> to vector<16x1xf32>
      %cst_11 = arith.constant 3.125000e-02 : f32
      %16 = vector.broadcast %cst_11 : f32 to vector<16x1xf32>
      %17 = arith.mulf %15, %16 : vector<16x1xf32>
      %cst_12 = arith.constant 9.99999974E-6 : f32
      %18 = vector.broadcast %cst_12 : f32 to vector<16x1xf32>
      %19 = arith.addf %17, %18 : vector<16x1xf32>
      %20 = math.rsqrt %19 : vector<16x1xf32>
      %21 = vector.broadcast %20 : vector<16x1xf32> to vector<16x32xf32>
      %22 = arith.mulf %12, %21 : vector<16x32xf32>
      %c0_13 = arith.constant 0 : index
      %c0_14 = arith.constant 0 : index
      %23 = vector.load %arg3[%c0_13, %c0_14] : memref<1x32xf32, #tpu.memory_space<vmem>>, vector<1x32xf32>
      %24 = vector.broadcast %23 : vector<1x32xf32> to vector<16x32xf32>
      %25 = arith.mulf %22, %24 : vector<16x32xf32>
      %26 = arith.truncf %25 : vector<16x32xf32> to vector<16x32xbf16>
      %c0_15 = arith.constant 0 : index
      %c0_16 = arith.constant 0 : index
      %27 = vector.load %arg7[%c0_15, %c0_16] : memref<16x32xbf16, #tpu.memory_space<vmem>>, vector<16x32xbf16>
      tpu.vector_store %arg7[%c0_15, %c0_16], %26 {strides = array<i32>} : memref<16x32xbf16, #tpu.memory_space<vmem>>, vector<16x32xbf16>,
    } else {
    }
    %c0 = arith.constant 0 : index
    %c0_1 = arith.constant 0 : index
    %3 = vector.load %arg7[%c0, %c0_1] : memref<16x32xbf16, #tpu.memory_space<vmem>>, vector<16x32xbf16>
    %c0_2 = arith.constant 0 : index
    %c0_3 = arith.constant 0 : index
    %4 = vector.load %arg4[%c0_2, %c0_3] : memref<32x96xbf16, #tpu.memory_space<vmem>>, vector<32x96xbf16>
    %cst = arith.constant dense<0.000000e+00> : vector<16x96xf32>
    %5 = tpu.matmul %3, %4, %cst {dimension_numbers = #tpu.dot_dimension_numbers<[1], [0], [0], [1], [0, 0, 1, 1], [], []>} : vector<16x32xbf16>, vector<32x96xbf16>, vector<16x96xf32> -> vector<16x96xf32>
    %c0_4 = arith.constant 0 : index
    %c0_5 = arith.constant 0 : index
    %6 = vector.load %arg5[%c0_4, %c0_5] : memref<1x96xf32, #tpu.memory_space<vmem>>, vector<1x96xf32>
    %7 = vector.broadcast %6 : vector<1x96xf32> to vector<16x96xf32>
    %8 = arith.addf %5, %7 : vector<16x96xf32>
    %9 = arith.truncf %8 : vector<16x96xf32> to vector<16x96xbf16>
    %c0_6 = arith.constant 0 : index
    %c0_7 = arith.constant 0 : index
    %10 = vector.load %arg6[%c0_6, %c0_7] : memref<16x96xbf16, #tpu.memory_space<vmem>>, vector<16x96xbf16>
    tpu.vector_store %arg6[%c0_6, %c0_7], %9 {strides = array<i32>} : memref<16x96xbf16, #tpu.memory_space<vmem>>, vector<16x96xbf16>,
    return
  }
  func.func @transform_0(%arg0: i32, %arg1: i32) -> (i32, i32) {
    %c0_i32 = arith.constant 0 : i32
    %c0_i32_0 = arith.constant 0 : i32
    return %arg0, %c0_i32 : i32, i32
  }
  func.func @transform_1(%arg0: i32, %arg1: i32) -> (i32, i32) {
    %c0_i32 = arith.constant 0 : i32
    %c0_i32_0 = arith.constant 0 : i32
    %c0_i32_1 = arith.constant 0 : i32
    return %c0_i32, %c0_i32_0 : i32, i32
  }
  func.func @transform_2(%arg0: i32, %arg1: i32) -> (i32, i32) {
    %c0_i32 = arith.constant 0 : i32
    %c0_i32_0 = arith.constant 0 : i32
    return %c0_i32, %arg1 : i32, i32
  }
  func.func @transform_3(%arg0: i32, %arg1: i32) -> (i32, i32) {
    %c0_i32 = arith.constant 0 : i32
    %c0_i32_0 = arith.constant 0 : i32
    return %c0_i32, %arg1 : i32, i32
  }
  func.func @transform_4(%arg0: i32, %arg1: i32) -> (i32, i32) {
    %c0_i32 = arith.constant 0 : i32
    return %arg0, %arg1 : i32, i32
  }
}

module attributes {stable_mosaic.version = 11 : i64} {
  func.func @_flash_kernel(%arg0: i32, %arg1: i32, %arg2: i32, %arg3: memref<8x8x8xbf16, #tpu.memory_space<vmem>>, %arg4: memref<8x8x8xbf16, #tpu.memory_space<vmem>>, %arg5: memref<8x8x8xbf16, #tpu.memory_space<vmem>>, %arg6: memref<8x8x8xbf16, #tpu.memory_space<vmem>>, %arg7: memref<8x8x1xf32, #tpu.memory_space<vmem>>, %arg8: memref<8x8x1xf32, #tpu.memory_space<vmem>>, %arg9: memref<8x8x8xf32, #tpu.memory_space<vmem>>) attributes {dimension_semantics = [#tpu.dimension_semantics<parallel>, #tpu.dimension_semantics<parallel>, #tpu.dimension_semantics<arbitrary>], iteration_bounds = array<i64: 1, 1, 1>, scalar_prefetch = 0 : i64, scratch_operands = 3 : i64, tpu.core_type = #tpu.core_type<tc>, window_params = [{transform_indices = @transform_0, window_bounds = array<i64: 8, 8, 8>}, {transform_indices = @transform_1, window_bounds = array<i64: 8, 8, 8>}, {transform_indices = @transform_2, window_bounds = array<i64: 8, 8, 8>}, {transform_indices = @transform_3, window_bounds = array<i64: 8, 8, 8>}]} {
    %c0_i32 = arith.constant 0 : i32
    %0 = arith.cmpi eq, %arg2, %c0_i32 : i32
    %1 = arith.extui %0 : i1 to i32
    %c0_i32_0 = arith.constant 0 : i32
    %2 = arith.cmpi ne, %1, %c0_i32_0 : i32
    scf.if %2 {
      %cst = arith.constant 0xFF800000 : f32
      %12 = vector.broadcast %cst : f32 to vector<8x8x1xf32>
      %c0 = arith.constant 0 : index
      %c0_5 = arith.constant 0 : index
      %c0_6 = arith.constant 0 : index
      %13 = vector.load %arg7[%c0, %c0_5, %c0_6] : memref<8x8x1xf32, #tpu.memory_space<vmem>>, vector<8x8x1xf32>
      tpu.vector_store %arg7[%c0, %c0_5, %c0_6], %12 {strides = array<i32>} : memref<8x8x1xf32, #tpu.memory_space<vmem>>, vector<8x8x1xf32>,
      %cst_7 = arith.constant 0.000000e+00 : f32
      %14 = vector.broadcast %cst_7 : f32 to vector<8x8x1xf32>
      %c0_8 = arith.constant 0 : index
      %c0_9 = arith.constant 0 : index
      %c0_10 = arith.constant 0 : index
      %15 = vector.load %arg8[%c0_8, %c0_9, %c0_10] : memref<8x8x1xf32, #tpu.memory_space<vmem>>, vector<8x8x1xf32>
      tpu.vector_store %arg8[%c0_8, %c0_9, %c0_10], %14 {strides = array<i32>} : memref<8x8x1xf32, #tpu.memory_space<vmem>>, vector<8x8x1xf32>,
      %cst_11 = arith.constant 0.000000e+00 : f32
      %16 = vector.broadcast %cst_11 : f32 to vector<8x8x8xf32>
      %c0_12 = arith.constant 0 : index
      %c0_13 = arith.constant 0 : index
      %c0_14 = arith.constant 0 : index
      %17 = vector.load %arg9[%c0_12, %c0_13, %c0_14] : memref<8x8x8xf32, #tpu.memory_space<vmem>>, vector<8x8x8xf32>
      tpu.vector_store %arg9[%c0_12, %c0_13, %c0_14], %16 {strides = array<i32>} : memref<8x8x8xf32, #tpu.memory_space<vmem>>, vector<8x8x8xf32>,
    } else {
    }
    %3 = arith.cmpi slt, %arg2, %arg1 : i32
    %4 = arith.extui %3 : i1 to i32
    %c0_i32_1 = arith.constant 0 : i32
    %5 = arith.cmpi ne, %4, %c0_i32_1 : i32
    scf.if %5 {
      %c0 = arith.constant 0 : index
      %c0_5 = arith.constant 0 : index
      %c0_6 = arith.constant 0 : index
      %12 = vector.load %arg3[%c0, %c0_5, %c0_6] : memref<8x8x8xbf16, #tpu.memory_space<vmem>>, vector<8x8x8xbf16>
      %c0_7 = arith.constant 0 : index
      %c0_8 = arith.constant 0 : index
      %c0_9 = arith.constant 0 : index
      %13 = vector.load %arg4[%c0_7, %c0_8, %c0_9] : memref<8x8x8xbf16, #tpu.memory_space<vmem>>, vector<8x8x8xbf16>
      "tpu.trace_start"() <{level = 10 : i32, message = "gqd,gkd->gqk"}> : () -> ()
      %cst = arith.constant dense<0.000000e+00> : vector<8x8x8xf32>
      %14 = tpu.matmul %12, %13, %cst {dimension_numbers = #tpu.dot_dimension_numbers<[2], [2], [1], [1], [0, 0, 0, 1, 1, 1], [0], [0]>} : vector<8x8x8xbf16>, vector<8x8x8xbf16>, vector<8x8x8xf32> -> vector<8x8x8xf32>
      "tpu.trace_stop"() : () -> ()
      %cst_10 = arith.constant 0.353553385 : f32
      %15 = vector.broadcast %cst_10 : f32 to vector<8x8x8xf32>
      %16 = arith.mulf %14, %15 : vector<8x8x8xf32>
      %c0_11 = arith.constant 0 : index
      %c0_12 = arith.constant 0 : index
      %c0_13 = arith.constant 0 : index
      %17 = vector.load %arg7[%c0_11, %c0_12, %c0_13] : memref<8x8x1xf32, #tpu.memory_space<vmem>>, vector<8x8x1xf32>
      %cst_14 = arith.constant dense<0xFF800000> : vector<8x8xf32>
      %18 = vector.multi_reduction <maximumf>, %16, %cst_14 [2] : vector<8x8x8xf32> to vector<8x8xf32>
      %19 = vector.shape_cast %18 : vector<8x8xf32> to vector<8x8x1xf32>
      %20 = arith.maximumf %17, %19 : vector<8x8x1xf32>
      %21 = arith.subf %17, %20 : vector<8x8x1xf32>
      %22 = math.exp %21 : vector<8x8x1xf32>
      %23 = vector.broadcast %20 : vector<8x8x1xf32> to vector<8x8x8xf32>
      %24 = arith.subf %16, %23 : vector<8x8x8xf32>
      %25 = math.exp %24 : vector<8x8x8xf32>
      %c0_15 = arith.constant 0 : index
      %c0_16 = arith.constant 0 : index
      %c0_17 = arith.constant 0 : index
      %26 = vector.load %arg8[%c0_15, %c0_16, %c0_17] : memref<8x8x1xf32, #tpu.memory_space<vmem>>, vector<8x8x1xf32>
      %27 = arith.mulf %22, %26 : vector<8x8x1xf32>
      %cst_18 = arith.constant dense<0.000000e+00> : vector<8x8xf32>
      %28 = vector.multi_reduction <add>, %25, %cst_18 [2] : vector<8x8x8xf32> to vector<8x8xf32>
      %29 = vector.shape_cast %28 : vector<8x8xf32> to vector<8x8x1xf32>
      %30 = arith.addf %27, %29 : vector<8x8x1xf32>
      %c0_19 = arith.constant 0 : index
      %c0_20 = arith.constant 0 : index
      %c0_21 = arith.constant 0 : index
      %31 = vector.load %arg8[%c0_19, %c0_20, %c0_21] : memref<8x8x1xf32, #tpu.memory_space<vmem>>, vector<8x8x1xf32>
      tpu.vector_store %arg8[%c0_19, %c0_20, %c0_21], %30 {strides = array<i32>} : memref<8x8x1xf32, #tpu.memory_space<vmem>>, vector<8x8x1xf32>,
      %c0_22 = arith.constant 0 : index
      %c0_23 = arith.constant 0 : index
      %c0_24 = arith.constant 0 : index
      %32 = vector.load %arg9[%c0_22, %c0_23, %c0_24] : memref<8x8x8xf32, #tpu.memory_space<vmem>>, vector<8x8x8xf32>
      %33 = vector.broadcast %22 : vector<8x8x1xf32> to vector<8x8x8xf32>
      %34 = arith.mulf %33, %32 : vector<8x8x8xf32>
      %35 = arith.truncf %25 : vector<8x8x8xf32> to vector<8x8x8xbf16>
      %c0_25 = arith.constant 0 : index
      %c0_26 = arith.constant 0 : index
      %c0_27 = arith.constant 0 : index
      %36 = vector.load %arg5[%c0_25, %c0_26, %c0_27] : memref<8x8x8xbf16, #tpu.memory_space<vmem>>, vector<8x8x8xbf16>
      "tpu.trace_start"() <{level = 10 : i32, message = "gqk,gkd->gqd"}> : () -> ()
      %cst_28 = arith.constant dense<0.000000e+00> : vector<8x8x8xf32>
      %37 = tpu.matmul %35, %36, %cst_28 {dimension_numbers = #tpu.dot_dimension_numbers<[2], [1], [1], [2], [0, 0, 0, 1, 1, 2], [0], [0]>} : vector<8x8x8xbf16>, vector<8x8x8xbf16>, vector<8x8x8xf32> -> vector<8x8x8xf32>
      "tpu.trace_stop"() : () -> ()
      %38 = arith.addf %34, %37 : vector<8x8x8xf32>
      %c0_29 = arith.constant 0 : index
      %c0_30 = arith.constant 0 : index
      %c0_31 = arith.constant 0 : index
      %39 = vector.load %arg9[%c0_29, %c0_30, %c0_31] : memref<8x8x8xf32, #tpu.memory_space<vmem>>, vector<8x8x8xf32>
      tpu.vector_store %arg9[%c0_29, %c0_30, %c0_31], %38 {strides = array<i32>} : memref<8x8x8xf32, #tpu.memory_space<vmem>>, vector<8x8x8xf32>,
      %c0_32 = arith.constant 0 : index
      %c0_33 = arith.constant 0 : index
      %c0_34 = arith.constant 0 : index
      %40 = vector.load %arg7[%c0_32, %c0_33, %c0_34] : memref<8x8x1xf32, #tpu.memory_space<vmem>>, vector<8x8x1xf32>
      tpu.vector_store %arg7[%c0_32, %c0_33, %c0_34], %20 {strides = array<i32>} : memref<8x8x1xf32, #tpu.memory_space<vmem>>, vector<8x8x1xf32>,
    } else {
    }
    %6 = arith.cmpi eq, %arg2, %arg1 : i32
    %7 = arith.extui %6 : i1 to i32
    %c0_i32_2 = arith.constant 0 : i32
    %8 = arith.cmpi ne, %7, %c0_i32_2 : i32
    scf.if %8 {
      %c0 = arith.constant 0 : index
      %c0_5 = arith.constant 0 : index
      %c0_6 = arith.constant 0 : index
      %12 = vector.load %arg3[%c0, %c0_5, %c0_6] : memref<8x8x8xbf16, #tpu.memory_space<vmem>>, vector<8x8x8xbf16>
      %c0_7 = arith.constant 0 : index
      %c0_8 = arith.constant 0 : index
      %c0_9 = arith.constant 0 : index
      %13 = vector.load %arg4[%c0_7, %c0_8, %c0_9] : memref<8x8x8xbf16, #tpu.memory_space<vmem>>, vector<8x8x8xbf16>
      "tpu.trace_start"() <{level = 10 : i32, message = "gqd,gkd->gqk"}> : () -> ()
      %cst = arith.constant dense<0.000000e+00> : vector<8x8x8xf32>
      %14 = tpu.matmul %12, %13, %cst {dimension_numbers = #tpu.dot_dimension_numbers<[2], [2], [1], [1], [0, 0, 0, 1, 1, 1], [0], [0]>} : vector<8x8x8xbf16>, vector<8x8x8xbf16>, vector<8x8x8xf32> -> vector<8x8x8xf32>
      "tpu.trace_stop"() : () -> ()
      %cst_10 = arith.constant 0.353553385 : f32
      %15 = vector.broadcast %cst_10 : f32 to vector<8x8x8xf32>
      %16 = arith.mulf %14, %15 : vector<8x8x8xf32>
      %c8_i32 = arith.constant 8 : i32
      %17 = arith.muli %arg1, %c8_i32 : i32
      %18 = tpu.iota {dimensions = array<i32: 0>} : vector<8x8xi32>
      %19 = vector.broadcast %17 : i32 to vector<8x8xi32>
      %20 = arith.addi %19, %18 : vector<8x8xi32>
      %c8_i32_11 = arith.constant 8 : i32
      %21 = arith.muli %arg2, %c8_i32_11 : i32
      %22 = tpu.iota {dimensions = array<i32: 1>} : vector<8x8xi32>
      %23 = vector.broadcast %21 : i32 to vector<8x8xi32>
      %24 = arith.addi %23, %22 : vector<8x8xi32>
      %25 = arith.cmpi sge, %20, %24 : vector<8x8xi32>
      %26 = vector.shape_cast %25 : vector<8x8xi1> to vector<1x8x8xi1>
      %cst_12 = arith.constant -1.000000e+30 : f32
      %27 = vector.shape_cast %26 : vector<1x8x8xi1> to vector<1x8x8xi1>
      %28 = vector.broadcast %27 : vector<1x8x8xi1> to vector<8x8x8xi1>
      %29 = vector.broadcast %cst_12 : f32 to vector<8x8x8xf32>
      %30 = arith.select %28, %16, %29 : vector<8x8x8xi1>, vector<8x8x8xf32>
      %c0_13 = arith.constant 0 : index
      %c0_14 = arith.constant 0 : index
      %c0_15 = arith.constant 0 : index
      %31 = vector.load %arg7[%c0_13, %c0_14, %c0_15] : memref<8x8x1xf32, #tpu.memory_space<vmem>>, vector<8x8x1xf32>
      %cst_16 = arith.constant dense<0xFF800000> : vector<8x8xf32>
      %32 = vector.multi_reduction <maximumf>, %30, %cst_16 [2] : vector<8x8x8xf32> to vector<8x8xf32>
      %33 = vector.shape_cast %32 : vector<8x8xf32> to vector<8x8x1xf32>
      %34 = arith.maximumf %31, %33 : vector<8x8x1xf32>
      %35 = arith.subf %31, %34 : vector<8x8x1xf32>
      %36 = math.exp %35 : vector<8x8x1xf32>
      %37 = vector.broadcast %34 : vector<8x8x1xf32> to vector<8x8x8xf32>
      %38 = arith.subf %30, %37 : vector<8x8x8xf32>
      %39 = math.exp %38 : vector<8x8x8xf32>
      %c0_17 = arith.constant 0 : index
      %c0_18 = arith.constant 0 : index
      %c0_19 = arith.constant 0 : index
      %40 = vector.load %arg8[%c0_17, %c0_18, %c0_19] : memref<8x8x1xf32, #tpu.memory_space<vmem>>, vector<8x8x1xf32>
      %41 = arith.mulf %36, %40 : vector<8x8x1xf32>
      %cst_20 = arith.constant dense<0.000000e+00> : vector<8x8xf32>
      %42 = vector.multi_reduction <add>, %39, %cst_20 [2] : vector<8x8x8xf32> to vector<8x8xf32>
      %43 = vector.shape_cast %42 : vector<8x8xf32> to vector<8x8x1xf32>
      %44 = arith.addf %41, %43 : vector<8x8x1xf32>
      %c0_21 = arith.constant 0 : index
      %c0_22 = arith.constant 0 : index
      %c0_23 = arith.constant 0 : index
      %45 = vector.load %arg8[%c0_21, %c0_22, %c0_23] : memref<8x8x1xf32, #tpu.memory_space<vmem>>, vector<8x8x1xf32>
      tpu.vector_store %arg8[%c0_21, %c0_22, %c0_23], %44 {strides = array<i32>} : memref<8x8x1xf32, #tpu.memory_space<vmem>>, vector<8x8x1xf32>,
      %c0_24 = arith.constant 0 : index
      %c0_25 = arith.constant 0 : index
      %c0_26 = arith.constant 0 : index
      %46 = vector.load %arg9[%c0_24, %c0_25, %c0_26] : memref<8x8x8xf32, #tpu.memory_space<vmem>>, vector<8x8x8xf32>
      %47 = vector.broadcast %36 : vector<8x8x1xf32> to vector<8x8x8xf32>
      %48 = arith.mulf %47, %46 : vector<8x8x8xf32>
      %49 = arith.truncf %39 : vector<8x8x8xf32> to vector<8x8x8xbf16>
      %c0_27 = arith.constant 0 : index
      %c0_28 = arith.constant 0 : index
      %c0_29 = arith.constant 0 : index
      %50 = vector.load %arg5[%c0_27, %c0_28, %c0_29] : memref<8x8x8xbf16, #tpu.memory_space<vmem>>, vector<8x8x8xbf16>
      "tpu.trace_start"() <{level = 10 : i32, message = "gqk,gkd->gqd"}> : () -> ()
      %cst_30 = arith.constant dense<0.000000e+00> : vector<8x8x8xf32>
      %51 = tpu.matmul %49, %50, %cst_30 {dimension_numbers = #tpu.dot_dimension_numbers<[2], [1], [1], [2], [0, 0, 0, 1, 1, 2], [0], [0]>} : vector<8x8x8xbf16>, vector<8x8x8xbf16>, vector<8x8x8xf32> -> vector<8x8x8xf32>
      "tpu.trace_stop"() : () -> ()
      %52 = arith.addf %48, %51 : vector<8x8x8xf32>
      %c0_31 = arith.constant 0 : index
      %c0_32 = arith.constant 0 : index
      %c0_33 = arith.constant 0 : index
      %53 = vector.load %arg9[%c0_31, %c0_32, %c0_33] : memref<8x8x8xf32, #tpu.memory_space<vmem>>, vector<8x8x8xf32>
      tpu.vector_store %arg9[%c0_31, %c0_32, %c0_33], %52 {strides = array<i32>} : memref<8x8x8xf32, #tpu.memory_space<vmem>>, vector<8x8x8xf32>,
      %c0_34 = arith.constant 0 : index
      %c0_35 = arith.constant 0 : index
      %c0_36 = arith.constant 0 : index
      %54 = vector.load %arg7[%c0_34, %c0_35, %c0_36] : memref<8x8x1xf32, #tpu.memory_space<vmem>>, vector<8x8x1xf32>
      tpu.vector_store %arg7[%c0_34, %c0_35, %c0_36], %34 {strides = array<i32>} : memref<8x8x1xf32, #tpu.memory_space<vmem>>, vector<8x8x1xf32>,
    } else {
    }
    %c0_i32_3 = arith.constant 0 : i32
    %9 = arith.cmpi eq, %arg2, %c0_i32_3 : i32
    %10 = arith.extui %9 : i1 to i32
    %c0_i32_4 = arith.constant 0 : i32
    %11 = arith.cmpi ne, %10, %c0_i32_4 : i32
    scf.if %11 {
      %c0 = arith.constant 0 : index
      %c0_5 = arith.constant 0 : index
      %c0_6 = arith.constant 0 : index
      %12 = vector.load %arg9[%c0, %c0_5, %c0_6] : memref<8x8x8xf32, #tpu.memory_space<vmem>>, vector<8x8x8xf32>
      %c0_7 = arith.constant 0 : index
      %c0_8 = arith.constant 0 : index
      %c0_9 = arith.constant 0 : index
      %13 = vector.load %arg8[%c0_7, %c0_8, %c0_9] : memref<8x8x1xf32, #tpu.memory_space<vmem>>, vector<8x8x1xf32>
      %14 = tpu.reciprocal %13 {approx = true} : vector<8x8x1xf32> -> vector<8x8x1xf32>
      %15 = vector.broadcast %14 : vector<8x8x1xf32> to vector<8x8x8xf32>
      %16 = arith.mulf %12, %15 : vector<8x8x8xf32>
      %17 = arith.truncf %16 : vector<8x8x8xf32> to vector<8x8x8xbf16>
      %c0_10 = arith.constant 0 : index
      %c0_11 = arith.constant 0 : index
      %c0_12 = arith.constant 0 : index
      %18 = vector.load %arg6[%c0_10, %c0_11, %c0_12] : memref<8x8x8xbf16, #tpu.memory_space<vmem>>, vector<8x8x8xbf16>
      tpu.vector_store %arg6[%c0_10, %c0_11, %c0_12], %17 {strides = array<i32>} : memref<8x8x8xbf16, #tpu.memory_space<vmem>>, vector<8x8x8xbf16>,
    } else {
    }
    return
  }
  func.func @transform_0(%arg0: i32, %arg1: i32, %arg2: i32) -> (i32, i32, i32) {
    %c0_i32 = arith.constant 0 : i32
    %c0_i32_0 = arith.constant 0 : i32
    return %arg0, %arg1, %c0_i32 : i32, i32, i32
  }
  func.func @transform_1(%arg0: i32, %arg1: i32, %arg2: i32) -> (i32, i32, i32) {
    %0 = arith.minsi %arg2, %arg1 : i32
    %c0_i32 = arith.constant 0 : i32
    %c0_i32_0 = arith.constant 0 : i32
    return %arg0, %0, %c0_i32 : i32, i32, i32
  }
  func.func @transform_2(%arg0: i32, %arg1: i32, %arg2: i32) -> (i32, i32, i32) {
    %0 = arith.minsi %arg2, %arg1 : i32
    %c0_i32 = arith.constant 0 : i32
    %c0_i32_0 = arith.constant 0 : i32
    return %arg0, %0, %c0_i32 : i32, i32, i32
  }
  func.func @transform_3(%arg0: i32, %arg1: i32, %arg2: i32) -> (i32, i32, i32) {
    %c0_i32 = arith.constant 0 : i32
    %c0_i32_0 = arith.constant 0 : i32
    return %arg0, %arg1, %c0_i32 : i32, i32, i32
  }
}

module attributes {stable_mosaic.version = 11 : i64} {
  func.func @_matmul_res_kernel(%arg0: i32, %arg1: i32, %arg2: i32, %arg3: memref<16x32xbf16, #tpu.memory_space<vmem>>, %arg4: memref<32x32xbf16, #tpu.memory_space<vmem>>, %arg5: memref<1x32xf32, #tpu.memory_space<vmem>>, %arg6: memref<16x32xbf16, #tpu.memory_space<vmem>>, %arg7: memref<16x32xbf16, #tpu.memory_space<vmem>>, %arg8: memref<16x32xf32, #tpu.memory_space<vmem>>) attributes {dimension_semantics = [#tpu.dimension_semantics<parallel>, #tpu.dimension_semantics<parallel>, #tpu.dimension_semantics<arbitrary>], iteration_bounds = array<i64: 1, 1, 1>, scalar_prefetch = 0 : i64, scratch_operands = 1 : i64, tpu.core_type = #tpu.core_type<tc>, window_params = [{transform_indices = @transform_0, window_bounds = array<i64: 16, 32>}, {transform_indices = @transform_1, window_bounds = array<i64: 32, 32>}, {transform_indices = @transform_2, window_bounds = array<i64: 1, 32>}, {transform_indices = @transform_3, window_bounds = array<i64: 16, 32>}, {transform_indices = @transform_4, window_bounds = array<i64: 16, 32>}]} {
    %c0_i32 = arith.constant 0 : i32
    %0 = arith.cmpi eq, %arg2, %c0_i32 : i32
    %1 = arith.extui %0 : i1 to i32
    %c0_i32_0 = arith.constant 0 : i32
    %2 = arith.cmpi ne, %1, %c0_i32_0 : i32
    scf.if %2 {
      %cst_10 = arith.constant 0.000000e+00 : f32
      %12 = vector.broadcast %cst_10 : f32 to vector<16x32xf32>
      %c0_11 = arith.constant 0 : index
      %c0_12 = arith.constant 0 : index
      %13 = vector.load %arg8[%c0_11, %c0_12] : memref<16x32xf32, #tpu.memory_space<vmem>>, vector<16x32xf32>
      tpu.vector_store %arg8[%c0_11, %c0_12], %12 {strides = array<i32>} : memref<16x32xf32, #tpu.memory_space<vmem>>, vector<16x32xf32>,
    } else {
    }
    %c0 = arith.constant 0 : index
    %c0_1 = arith.constant 0 : index
    %3 = vector.load %arg8[%c0, %c0_1] : memref<16x32xf32, #tpu.memory_space<vmem>>, vector<16x32xf32>
    %c0_2 = arith.constant 0 : index
    %c0_3 = arith.constant 0 : index
    %4 = vector.load %arg3[%c0_2, %c0_3] : memref<16x32xbf16, #tpu.memory_space<vmem>>, vector<16x32xbf16>
    %c0_4 = arith.constant 0 : index
    %c0_5 = arith.constant 0 : index
    %5 = vector.load %arg4[%c0_4, %c0_5] : memref<32x32xbf16, #tpu.memory_space<vmem>>, vector<32x32xbf16>
    %cst = arith.constant dense<0.000000e+00> : vector<16x32xf32>
    %6 = tpu.matmul %4, %5, %cst {dimension_numbers = #tpu.dot_dimension_numbers<[1], [0], [0], [1], [0, 0, 1, 1], [], []>} : vector<16x32xbf16>, vector<32x32xbf16>, vector<16x32xf32> -> vector<16x32xf32>
    %7 = arith.addf %3, %6 : vector<16x32xf32>
    %c0_6 = arith.constant 0 : index
    %c0_7 = arith.constant 0 : index
    %8 = vector.load %arg8[%c0_6, %c0_7] : memref<16x32xf32, #tpu.memory_space<vmem>>, vector<16x32xf32>
    tpu.vector_store %arg8[%c0_6, %c0_7], %7 {strides = array<i32>} : memref<16x32xf32, #tpu.memory_space<vmem>>, vector<16x32xf32>,
    %c0_i32_8 = arith.constant 0 : i32
    %9 = arith.cmpi eq, %arg2, %c0_i32_8 : i32
    %10 = arith.extui %9 : i1 to i32
    %c0_i32_9 = arith.constant 0 : i32
    %11 = arith.cmpi ne, %10, %c0_i32_9 : i32
    scf.if %11 {
      %c0_10 = arith.constant 0 : index
      %c0_11 = arith.constant 0 : index
      %12 = vector.load %arg8[%c0_10, %c0_11] : memref<16x32xf32, #tpu.memory_space<vmem>>, vector<16x32xf32>
      %c0_12 = arith.constant 0 : index
      %c0_13 = arith.constant 0 : index
      %13 = vector.load %arg5[%c0_12, %c0_13] : memref<1x32xf32, #tpu.memory_space<vmem>>, vector<1x32xf32>
      %14 = vector.broadcast %13 : vector<1x32xf32> to vector<16x32xf32>
      %15 = arith.addf %12, %14 : vector<16x32xf32>
      %c0_14 = arith.constant 0 : index
      %c0_15 = arith.constant 0 : index
      %16 = vector.load %arg6[%c0_14, %c0_15] : memref<16x32xbf16, #tpu.memory_space<vmem>>, vector<16x32xbf16>
      %17 = arith.extf %16 : vector<16x32xbf16> to vector<16x32xf32>
      %18 = arith.addf %15, %17 : vector<16x32xf32>
      %19 = arith.truncf %18 : vector<16x32xf32> to vector<16x32xbf16>
      %c0_16 = arith.constant 0 : index
      %c0_17 = arith.constant 0 : index
      %20 = vector.load %arg7[%c0_16, %c0_17] : memref<16x32xbf16, #tpu.memory_space<vmem>>, vector<16x32xbf16>
      tpu.vector_store %arg7[%c0_16, %c0_17], %19 {strides = array<i32>} : memref<16x32xbf16, #tpu.memory_space<vmem>>, vector<16x32xbf16>,
    } else {
    }
    return
  }
  func.func @transform_0(%arg0: i32, %arg1: i32, %arg2: i32) -> (i32, i32) {
    %c0_i32 = arith.constant 0 : i32
    return %arg0, %arg2 : i32, i32
  }
  func.func @transform_1(%arg0: i32, %arg1: i32, %arg2: i32) -> (i32, i32) {
    %c0_i32 = arith.constant 0 : i32
    return %arg2, %arg1 : i32, i32
  }
  func.func @transform_2(%arg0: i32, %arg1: i32, %arg2: i32) -> (i32, i32) {
    %c0_i32 = arith.constant 0 : i32
    %c0_i32_0 = arith.constant 0 : i32
    return %c0_i32, %arg1 : i32, i32
  }
  func.func @transform_3(%arg0: i32, %arg1: i32, %arg2: i32) -> (i32, i32) {
    %c0_i32 = arith.constant 0 : i32
    return %arg0, %arg1 : i32, i32
  }
  func.func @transform_4(%arg0: i32, %arg1: i32, %arg2: i32) -> (i32, i32) {
    %c0_i32 = arith.constant 0 : i32
    return %arg0, %arg1 : i32, i32
  }
}

module attributes {stable_mosaic.version = 11 : i64} {
  func.func @_norm_matmul_kernel(%arg0: i32, %arg1: i32, %arg2: memref<16x32xbf16, #tpu.memory_space<vmem>>, %arg3: memref<1x32xf32, #tpu.memory_space<vmem>>, %arg4: memref<32x128xbf16, #tpu.memory_space<vmem>>, %arg5: memref<1x128xf32, #tpu.memory_space<vmem>>, %arg6: memref<16x128xbf16, #tpu.memory_space<vmem>>, %arg7: memref<16x32xbf16, #tpu.memory_space<vmem>>) attributes {dimension_semantics = [#tpu.dimension_semantics<parallel>, #tpu.dimension_semantics<arbitrary>], iteration_bounds = array<i64: 1, 1>, scalar_prefetch = 0 : i64, scratch_operands = 1 : i64, tpu.core_type = #tpu.core_type<tc>, window_params = [{transform_indices = @transform_0, window_bounds = array<i64: 16, 32>}, {pipeline_mode = #tpu.pipeline_mode<synchronous>, transform_indices = @transform_1, window_bounds = array<i64: 1, 32>}, {transform_indices = @transform_2, window_bounds = array<i64: 32, 128>}, {transform_indices = @transform_3, window_bounds = array<i64: 1, 128>}, {transform_indices = @transform_4, window_bounds = array<i64: 16, 128>}]} {
    %c0_i32 = arith.constant 0 : i32
    %0 = arith.cmpi eq, %arg1, %c0_i32 : i32
    %1 = arith.extui %0 : i1 to i32
    %c0_i32_0 = arith.constant 0 : i32
    %2 = arith.cmpi ne, %1, %c0_i32_0 : i32
    scf.if %2 {
      %c0_12 = arith.constant 0 : index
      %c0_13 = arith.constant 0 : index
      %24 = vector.load %arg2[%c0_12, %c0_13] : memref<16x32xbf16, #tpu.memory_space<vmem>>, vector<16x32xbf16>
      %25 = arith.extf %24 : vector<16x32xbf16> to vector<16x32xf32>
      %26 = arith.mulf %25, %25 : vector<16x32xf32>
      %cst_14 = arith.constant dense<0.000000e+00> : vector<16xf32>
      %27 = vector.multi_reduction <add>, %26, %cst_14 [1] : vector<16x32xf32> to vector<16xf32>
      %28 = vector.shape_cast %27 : vector<16xf32> to vector<16x1xf32>
      %cst_15 = arith.constant 3.125000e-02 : f32
      %29 = vector.broadcast %cst_15 : f32 to vector<16x1xf32>
      %30 = arith.mulf %28, %29 : vector<16x1xf32>
      %cst_16 = arith.constant 9.99999974E-6 : f32
      %31 = vector.broadcast %cst_16 : f32 to vector<16x1xf32>
      %32 = arith.addf %30, %31 : vector<16x1xf32>
      %33 = math.rsqrt %32 : vector<16x1xf32>
      %34 = vector.broadcast %33 : vector<16x1xf32> to vector<16x32xf32>
      %35 = arith.mulf %25, %34 : vector<16x32xf32>
      %c0_17 = arith.constant 0 : index
      %c0_18 = arith.constant 0 : index
      %36 = vector.load %arg3[%c0_17, %c0_18] : memref<1x32xf32, #tpu.memory_space<vmem>>, vector<1x32xf32>
      %37 = vector.broadcast %36 : vector<1x32xf32> to vector<16x32xf32>
      %38 = arith.mulf %35, %37 : vector<16x32xf32>
      %39 = arith.truncf %38 : vector<16x32xf32> to vector<16x32xbf16>
      %c0_19 = arith.constant 0 : index
      %c0_20 = arith.constant 0 : index
      %40 = vector.load %arg7[%c0_19, %c0_20] : memref<16x32xbf16, #tpu.memory_space<vmem>>, vector<16x32xbf16>
      tpu.vector_store %arg7[%c0_19, %c0_20], %39 {strides = array<i32>} : memref<16x32xbf16, #tpu.memory_space<vmem>>, vector<16x32xbf16>,
    } else {
    }
    %c0 = arith.constant 0 : index
    %c0_1 = arith.constant 0 : index
    %3 = vector.load %arg7[%c0, %c0_1] : memref<16x32xbf16, #tpu.memory_space<vmem>>, vector<16x32xbf16>
    %c0_2 = arith.constant 0 : index
    %c0_3 = arith.constant 0 : index
    %4 = vector.load %arg4[%c0_2, %c0_3] : memref<32x128xbf16, #tpu.memory_space<vmem>>, vector<32x128xbf16>
    %cst = arith.constant dense<0.000000e+00> : vector<16x128xf32>
    %5 = tpu.matmul %3, %4, %cst {dimension_numbers = #tpu.dot_dimension_numbers<[1], [0], [0], [1], [0, 0, 1, 1], [], []>} : vector<16x32xbf16>, vector<32x128xbf16>, vector<16x128xf32> -> vector<16x128xf32>
    %c0_4 = arith.constant 0 : index
    %c0_5 = arith.constant 0 : index
    %6 = vector.load %arg5[%c0_4, %c0_5] : memref<1x128xf32, #tpu.memory_space<vmem>>, vector<1x128xf32>
    %7 = vector.broadcast %6 : vector<1x128xf32> to vector<16x128xf32>
    %8 = arith.addf %5, %7 : vector<16x128xf32>
    %9 = arith.mulf %8, %8 : vector<16x128xf32>
    %10 = arith.mulf %8, %9 : vector<16x128xf32>
    %cst_6 = arith.constant 4.471500e-02 : f32
    %11 = vector.broadcast %cst_6 : f32 to vector<16x128xf32>
    %12 = arith.mulf %11, %10 : vector<16x128xf32>
    %13 = arith.addf %8, %12 : vector<16x128xf32>
    %cst_7 = arith.constant 0.797884583 : f32
    %14 = vector.broadcast %cst_7 : f32 to vector<16x128xf32>
    %15 = arith.mulf %14, %13 : vector<16x128xf32>
    %16 = math.tanh %15 : vector<16x128xf32>
    %cst_8 = arith.constant 1.000000e+00 : f32
    %17 = vector.broadcast %cst_8 : f32 to vector<16x128xf32>
    %18 = arith.addf %17, %16 : vector<16x128xf32>
    %cst_9 = arith.constant 5.000000e-01 : f32
    %19 = vector.broadcast %cst_9 : f32 to vector<16x128xf32>
    %20 = arith.mulf %19, %18 : vector<16x128xf32>
    %21 = arith.mulf %8, %20 : vector<16x128xf32>
    %22 = arith.truncf %21 : vector<16x128xf32> to vector<16x128xbf16>
    %c0_10 = arith.constant 0 : index
    %c0_11 = arith.constant 0 : index
    %23 = vector.load %arg6[%c0_10, %c0_11] : memref<16x128xbf16, #tpu.memory_space<vmem>>, vector<16x128xbf16>
    tpu.vector_store %arg6[%c0_10, %c0_11], %22 {strides = array<i32>} : memref<16x128xbf16, #tpu.memory_space<vmem>>, vector<16x128xbf16>,
    return
  }
  func.func @transform_0(%arg0: i32, %arg1: i32) -> (i32, i32) {
    %c0_i32 = arith.constant 0 : i32
    %c0_i32_0 = arith.constant 0 : i32
    return %arg0, %c0_i32 : i32, i32
  }
  func.func @transform_1(%arg0: i32, %arg1: i32) -> (i32, i32) {
    %c0_i32 = arith.constant 0 : i32
    %c0_i32_0 = arith.constant 0 : i32
    %c0_i32_1 = arith.constant 0 : i32
    return %c0_i32, %c0_i32_0 : i32, i32
  }
  func.func @transform_2(%arg0: i32, %arg1: i32) -> (i32, i32) {
    %c0_i32 = arith.constant 0 : i32
    %c0_i32_0 = arith.constant 0 : i32
    return %c0_i32, %arg1 : i32, i32
  }
  func.func @transform_3(%arg0: i32, %arg1: i32) -> (i32, i32) {
    %c0_i32 = arith.constant 0 : i32
    %c0_i32_0 = arith.constant 0 : i32
    return %c0_i32, %arg1 : i32, i32
  }
  func.func @transform_4(%arg0: i32, %arg1: i32) -> (i32, i32) {
    %c0_i32 = arith.constant 0 : i32
    return %arg0, %arg1 : i32, i32
  }
}

module attributes {stable_mosaic.version = 11 : i64} {
  func.func @_norm_matmul_kernel(%arg0: i32, %arg1: i32, %arg2: memref<16x32xbf16, #tpu.memory_space<vmem>>, %arg3: memref<1x32xf32, #tpu.memory_space<vmem>>, %arg4: memref<32x64xbf16, #tpu.memory_space<vmem>>, %arg5: memref<1x64xf32, #tpu.memory_space<vmem>>, %arg6: memref<16x64xf32, #tpu.memory_space<vmem>>, %arg7: memref<16x32xbf16, #tpu.memory_space<vmem>>) attributes {dimension_semantics = [#tpu.dimension_semantics<parallel>, #tpu.dimension_semantics<arbitrary>], iteration_bounds = array<i64: 1, 1>, scalar_prefetch = 0 : i64, scratch_operands = 1 : i64, tpu.core_type = #tpu.core_type<tc>, window_params = [{transform_indices = @transform_0, window_bounds = array<i64: 16, 32>}, {pipeline_mode = #tpu.pipeline_mode<synchronous>, transform_indices = @transform_1, window_bounds = array<i64: 1, 32>}, {transform_indices = @transform_2, window_bounds = array<i64: 32, 64>}, {transform_indices = @transform_3, window_bounds = array<i64: 1, 64>}, {transform_indices = @transform_4, window_bounds = array<i64: 16, 64>}]} {
    %c0_i32 = arith.constant 0 : i32
    %0 = arith.cmpi eq, %arg1, %c0_i32 : i32
    %1 = arith.extui %0 : i1 to i32
    %c0_i32_0 = arith.constant 0 : i32
    %2 = arith.cmpi ne, %1, %c0_i32_0 : i32
    scf.if %2 {
      %c0_8 = arith.constant 0 : index
      %c0_9 = arith.constant 0 : index
      %10 = vector.load %arg2[%c0_8, %c0_9] : memref<16x32xbf16, #tpu.memory_space<vmem>>, vector<16x32xbf16>
      %11 = arith.extf %10 : vector<16x32xbf16> to vector<16x32xf32>
      %12 = arith.mulf %11, %11 : vector<16x32xf32>
      %cst_10 = arith.constant dense<0.000000e+00> : vector<16xf32>
      %13 = vector.multi_reduction <add>, %12, %cst_10 [1] : vector<16x32xf32> to vector<16xf32>
      %14 = vector.shape_cast %13 : vector<16xf32> to vector<16x1xf32>
      %cst_11 = arith.constant 3.125000e-02 : f32
      %15 = vector.broadcast %cst_11 : f32 to vector<16x1xf32>
      %16 = arith.mulf %14, %15 : vector<16x1xf32>
      %cst_12 = arith.constant 9.99999974E-6 : f32
      %17 = vector.broadcast %cst_12 : f32 to vector<16x1xf32>
      %18 = arith.addf %16, %17 : vector<16x1xf32>
      %19 = math.rsqrt %18 : vector<16x1xf32>
      %20 = vector.broadcast %19 : vector<16x1xf32> to vector<16x32xf32>
      %21 = arith.mulf %11, %20 : vector<16x32xf32>
      %c0_13 = arith.constant 0 : index
      %c0_14 = arith.constant 0 : index
      %22 = vector.load %arg3[%c0_13, %c0_14] : memref<1x32xf32, #tpu.memory_space<vmem>>, vector<1x32xf32>
      %23 = vector.broadcast %22 : vector<1x32xf32> to vector<16x32xf32>
      %24 = arith.mulf %21, %23 : vector<16x32xf32>
      %25 = arith.truncf %24 : vector<16x32xf32> to vector<16x32xbf16>
      %c0_15 = arith.constant 0 : index
      %c0_16 = arith.constant 0 : index
      %26 = vector.load %arg7[%c0_15, %c0_16] : memref<16x32xbf16, #tpu.memory_space<vmem>>, vector<16x32xbf16>
      tpu.vector_store %arg7[%c0_15, %c0_16], %25 {strides = array<i32>} : memref<16x32xbf16, #tpu.memory_space<vmem>>, vector<16x32xbf16>,
    } else {
    }
    %c0 = arith.constant 0 : index
    %c0_1 = arith.constant 0 : index
    %3 = vector.load %arg7[%c0, %c0_1] : memref<16x32xbf16, #tpu.memory_space<vmem>>, vector<16x32xbf16>
    %c0_2 = arith.constant 0 : index
    %c0_3 = arith.constant 0 : index
    %4 = vector.load %arg4[%c0_2, %c0_3] : memref<32x64xbf16, #tpu.memory_space<vmem>>, vector<32x64xbf16>
    %cst = arith.constant dense<0.000000e+00> : vector<16x64xf32>
    %5 = tpu.matmul %3, %4, %cst {dimension_numbers = #tpu.dot_dimension_numbers<[1], [0], [0], [1], [0, 0, 1, 1], [], []>} : vector<16x32xbf16>, vector<32x64xbf16>, vector<16x64xf32> -> vector<16x64xf32>
    %c0_4 = arith.constant 0 : index
    %c0_5 = arith.constant 0 : index
    %6 = vector.load %arg5[%c0_4, %c0_5] : memref<1x64xf32, #tpu.memory_space<vmem>>, vector<1x64xf32>
    %7 = vector.broadcast %6 : vector<1x64xf32> to vector<16x64xf32>
    %8 = arith.addf %5, %7 : vector<16x64xf32>
    %c0_6 = arith.constant 0 : index
    %c0_7 = arith.constant 0 : index
    %9 = vector.load %arg6[%c0_6, %c0_7] : memref<16x64xf32, #tpu.memory_space<vmem>>, vector<16x64xf32>
    tpu.vector_store %arg6[%c0_6, %c0_7], %8 {strides = array<i32>} : memref<16x64xf32, #tpu.memory_space<vmem>>, vector<16x64xf32>,
    return
  }
  func.func @transform_0(%arg0: i32, %arg1: i32) -> (i32, i32) {
    %c0_i32 = arith.constant 0 : i32
    %c0_i32_0 = arith.constant 0 : i32
    return %arg0, %c0_i32 : i32, i32
  }
  func.func @transform_1(%arg0: i32, %arg1: i32) -> (i32, i32) {
    %c0_i32 = arith.constant 0 : i32
    %c0_i32_0 = arith.constant 0 : i32
    %c0_i32_1 = arith.constant 0 : i32
    return %c0_i32, %c0_i32_0 : i32, i32
  }
  func.func @transform_2(%arg0: i32, %arg1: i32) -> (i32, i32) {
    %c0_i32 = arith.constant 0 : i32
    %c0_i32_0 = arith.constant 0 : i32
    return %c0_i32, %arg1 : i32, i32
  }
  func.func @transform_3(%arg0: i32, %arg1: i32) -> (i32, i32) {
    %c0_i32 = arith.constant 0 : i32
    %c0_i32_0 = arith.constant 0 : i32
    return %c0_i32, %arg1 : i32, i32
  }
  func.func @transform_4(%arg0: i32, %arg1: i32) -> (i32, i32) {
    %c0_i32 = arith.constant 0 : i32
    return %arg0, %arg1 : i32, i32
  }
}

module attributes {stable_mosaic.version = 11 : i64} {
  func.func @_matmul_res_kernel(%arg0: i32, %arg1: i32, %arg2: i32, %arg3: memref<16x128xbf16, #tpu.memory_space<vmem>>, %arg4: memref<128x32xbf16, #tpu.memory_space<vmem>>, %arg5: memref<1x32xf32, #tpu.memory_space<vmem>>, %arg6: memref<16x32xbf16, #tpu.memory_space<vmem>>, %arg7: memref<16x32xbf16, #tpu.memory_space<vmem>>, %arg8: memref<16x32xf32, #tpu.memory_space<vmem>>) attributes {dimension_semantics = [#tpu.dimension_semantics<parallel>, #tpu.dimension_semantics<parallel>, #tpu.dimension_semantics<arbitrary>], iteration_bounds = array<i64: 1, 1, 1>, scalar_prefetch = 0 : i64, scratch_operands = 1 : i64, tpu.core_type = #tpu.core_type<tc>, window_params = [{transform_indices = @transform_0, window_bounds = array<i64: 16, 128>}, {transform_indices = @transform_1, window_bounds = array<i64: 128, 32>}, {transform_indices = @transform_2, window_bounds = array<i64: 1, 32>}, {transform_indices = @transform_3, window_bounds = array<i64: 16, 32>}, {transform_indices = @transform_4, window_bounds = array<i64: 16, 32>}]} {
    %c0_i32 = arith.constant 0 : i32
    %0 = arith.cmpi eq, %arg2, %c0_i32 : i32
    %1 = arith.extui %0 : i1 to i32
    %c0_i32_0 = arith.constant 0 : i32
    %2 = arith.cmpi ne, %1, %c0_i32_0 : i32
    scf.if %2 {
      %cst_10 = arith.constant 0.000000e+00 : f32
      %12 = vector.broadcast %cst_10 : f32 to vector<16x32xf32>
      %c0_11 = arith.constant 0 : index
      %c0_12 = arith.constant 0 : index
      %13 = vector.load %arg8[%c0_11, %c0_12] : memref<16x32xf32, #tpu.memory_space<vmem>>, vector<16x32xf32>
      tpu.vector_store %arg8[%c0_11, %c0_12], %12 {strides = array<i32>} : memref<16x32xf32, #tpu.memory_space<vmem>>, vector<16x32xf32>,
    } else {
    }
    %c0 = arith.constant 0 : index
    %c0_1 = arith.constant 0 : index
    %3 = vector.load %arg8[%c0, %c0_1] : memref<16x32xf32, #tpu.memory_space<vmem>>, vector<16x32xf32>
    %c0_2 = arith.constant 0 : index
    %c0_3 = arith.constant 0 : index
    %4 = vector.load %arg3[%c0_2, %c0_3] : memref<16x128xbf16, #tpu.memory_space<vmem>>, vector<16x128xbf16>
    %c0_4 = arith.constant 0 : index
    %c0_5 = arith.constant 0 : index
    %5 = vector.load %arg4[%c0_4, %c0_5] : memref<128x32xbf16, #tpu.memory_space<vmem>>, vector<128x32xbf16>
    %cst = arith.constant dense<0.000000e+00> : vector<16x32xf32>
    %6 = tpu.matmul %4, %5, %cst {dimension_numbers = #tpu.dot_dimension_numbers<[1], [0], [0], [1], [0, 0, 1, 1], [], []>} : vector<16x128xbf16>, vector<128x32xbf16>, vector<16x32xf32> -> vector<16x32xf32>
    %7 = arith.addf %3, %6 : vector<16x32xf32>
    %c0_6 = arith.constant 0 : index
    %c0_7 = arith.constant 0 : index
    %8 = vector.load %arg8[%c0_6, %c0_7] : memref<16x32xf32, #tpu.memory_space<vmem>>, vector<16x32xf32>
    tpu.vector_store %arg8[%c0_6, %c0_7], %7 {strides = array<i32>} : memref<16x32xf32, #tpu.memory_space<vmem>>, vector<16x32xf32>,
    %c0_i32_8 = arith.constant 0 : i32
    %9 = arith.cmpi eq, %arg2, %c0_i32_8 : i32
    %10 = arith.extui %9 : i1 to i32
    %c0_i32_9 = arith.constant 0 : i32
    %11 = arith.cmpi ne, %10, %c0_i32_9 : i32
    scf.if %11 {
      %c0_10 = arith.constant 0 : index
      %c0_11 = arith.constant 0 : index
      %12 = vector.load %arg8[%c0_10, %c0_11] : memref<16x32xf32, #tpu.memory_space<vmem>>, vector<16x32xf32>
      %c0_12 = arith.constant 0 : index
      %c0_13 = arith.constant 0 : index
      %13 = vector.load %arg5[%c0_12, %c0_13] : memref<1x32xf32, #tpu.memory_space<vmem>>, vector<1x32xf32>
      %14 = vector.broadcast %13 : vector<1x32xf32> to vector<16x32xf32>
      %15 = arith.addf %12, %14 : vector<16x32xf32>
      %c0_14 = arith.constant 0 : index
      %c0_15 = arith.constant 0 : index
      %16 = vector.load %arg6[%c0_14, %c0_15] : memref<16x32xbf16, #tpu.memory_space<vmem>>, vector<16x32xbf16>
      %17 = arith.extf %16 : vector<16x32xbf16> to vector<16x32xf32>
      %18 = arith.addf %15, %17 : vector<16x32xf32>
      %19 = arith.truncf %18 : vector<16x32xf32> to vector<16x32xbf16>
      %c0_16 = arith.constant 0 : index
      %c0_17 = arith.constant 0 : index
      %20 = vector.load %arg7[%c0_16, %c0_17] : memref<16x32xbf16, #tpu.memory_space<vmem>>, vector<16x32xbf16>
      tpu.vector_store %arg7[%c0_16, %c0_17], %19 {strides = array<i32>} : memref<16x32xbf16, #tpu.memory_space<vmem>>, vector<16x32xbf16>,
    } else {
    }
    return
  }
  func.func @transform_0(%arg0: i32, %arg1: i32, %arg2: i32) -> (i32, i32) {
    %c0_i32 = arith.constant 0 : i32
    return %arg0, %arg2 : i32, i32
  }
  func.func @transform_1(%arg0: i32, %arg1: i32, %arg2: i32) -> (i32, i32) {
    %c0_i32 = arith.constant 0 : i32
    return %arg2, %arg1 : i32, i32
  }
  func.func @transform_2(%arg0: i32, %arg1: i32, %arg2: i32) -> (i32, i32) {
    %c0_i32 = arith.constant 0 : i32
    %c0_i32_0 = arith.constant 0 : i32
    return %c0_i32, %arg1 : i32, i32
  }
  func.func @transform_3(%arg0: i32, %arg1: i32, %arg2: i32) -> (i32, i32) {
    %c0_i32 = arith.constant 0 : i32
    return %arg0, %arg1 : i32, i32
  }
  func.func @transform_4(%arg0: i32, %arg1: i32, %arg2: i32) -> (i32, i32) {
    %c0_i32 = arith.constant 0 : i32
    return %arg0, %arg1 : i32, i32
  }
}

</mosaic_0001>

<bundles_post_ra>
// kernel: model_forward.11
= control target key start
LH: loop header
LB: loop body
LE: loop exit
PB: predicated region body
PF: predicated region fallthrough
CT: control target
= control target key end

     0   :  { %vm28_vm0 = vcmask 261120   ;;  %vm69_vm4 = vcmask 257024   ;;  %vm119_vm8 = vcmask 781312   ;;  %s201_s0 = inlined_call_operand.vmem [shape: bf16[16,32], index: 0, kind: input, shape index: {}]   ;;  %s202_s1 = inlined_call_operand.vmem [shape: f32[1,32], index: 1, kind: input, shape index: {}]   ;;  %s203_s3 = inlined_call_operand.vmem [shape: f32[1,96], index: 3, kind: input, shape index: {}]   ;;  %s204_s2 = inlined_call_operand.vmem [shape: bf16[32,96], index: 2, kind: input, shape index: {}]   ;;  %s205_s4 = inlined_call_operand.vmem [shape: bf16[16,96], index: 4, kind: output, shape index: {}]  }
   0x1   :  { %v143_v0 = vld [vmem:[%s201_s0] sm:$0xff]   ;;  %v141_v10 = vld [vmem:[%s204_s2 + $0x8] sm:$0xff] }
   0x2   :  { %v144_v1 = vunpack.c.l.bf16 %v143_v0  ;;  %v145_v3 = vunpack.c.h.bf16 %v143_v0  ;;  %109 = vmatpush.bf16.msra.mxu0 %v141_v10  ;;  %v140_v11 = vld [vmem:[%s204_s2] sm:$0xff] }
   0x3   :  { %v146_v23 = vld [vmem:[%s202_s1] ss:$0 sm:$0xff] }
   0x4   :  { %v26_v2 = vmul.f32 %v144_v1, %v144_v1  ;;  %v27_v5 = vmul.f32 %v145_v3, %v145_v3  ;;  %v147_v37 = vld [vmem:[%s203_s3] ss:$0 sm:$0xff] }
   0x6   :  { %v29_v4 = vsel %vm28_vm0, %v26_v2, 0.0  ;;  %v32_v6 = vsel %vm28_vm0, %v27_v5, 0.0  ;;  %110 = vmatpush.bf16.msra.mxu0 %v140_v11 }
   0x7   :  { %30 = vadd.xlane.f32.xlu0 %v29_v4 }
   0xf   :  { %33 = vadd.xlane.f32.xlu0 %v32_v6 }
  0x7a   :  { %v31_v7 = vpop.xlane.xlu0 %30 }
  0x7b   :  { %v35_v8 = vmul.f32 0.03125, %v31_v7 }
  0x7d   :  { %v37_v9 = vadd.f32 1e-05, %v35_v8 }
  0x7f   :  { %148 = vrsqrt.f32 %v37_v9  ;;  %vm45_vm2 = vweird.f32 %v37_v9 }
  0x82   :  { %v34_v12 = vpop.xlane.xlu0 %33 }
  0x83   :  { %v36_v13 = vmul.f32 0.03125, %v34_v12 }
  0x85   :  { %v149_v14 = vpop.eup %148  ;;  %v38_v15 = vadd.f32 1e-05, %v36_v13 }
  0x86   :  { %v40_v16 = vmul.f32 %v149_v14, %v37_v9  ;;  %vm46_vm1 = vweird.f32 %v149_v14 }
  0x87   :  { %150 = vrsqrt.f32 %v38_v15  ;;  %vm47_vm3 = vmor %vm45_vm2, %vm46_vm1  ;;  %vm55_vm6 = vweird.f32 %v38_v15 }
  0x88   :  { %v41_v17 = vmul.f32 %v149_v14, %v40_v16 }
  0x8a   :  { %v42_v18 = vmul.f32 0.5, %v41_v17 }
  0x8c   :  { %v43_v19 = vsub.f32 1.5, %v42_v18 }
  0x8d   :  { %v151_v20 = vpop.eup %150 }
  0x8e   :  { %v44_v21 = vmul.f32 %v149_v14, %v43_v19  ;;  %v50_v22 = vmul.f32 %v151_v20, %v38_v15  ;;  %vm56_vm5 = vweird.f32 %v151_v20 }
  0x8f   :  { %vm57_vm7 = vmor %vm55_vm6, %vm56_vm5 }
  0x90   :  { %v48_v24 = vsel %vm47_vm3, %v149_v14, %v44_v21  ;;  %v51_v25 = vmul.f32 %v151_v20, %v50_v22 }
  0x91   :  { %v59_v26 = vmul.f32 %v144_v1, %v48_v24 }
  0x92   :  { %v52_v27 = vmul.f32 0.5, %v51_v25 }
  0x93   :  { %v65_v28 = vmul.f32 %v146_v23, %v59_v26 }
  0x94   :  { %v53_v29 = vsub.f32 1.5, %v52_v27 }
  0x95   :  { %v67_v30 = vpack.c.bf16 %v65_v28, %v65_v28 }
  0x96   :  { %v54_v31 = vmul.f32 %v151_v20, %v53_v29 }
  0x97   :  { %70 = vst.msk [vmem:[#allocation2] sm:$0xf] %vm69_vm4, %v67_v30 }
  0x98   :  { %v58_v32 = vsel %vm57_vm7, %v151_v20, %v54_v31 }
  0x99   :  { %v60_v33 = vmul.f32 %v145_v3, %v58_v32 }
  0x9b   :  { %v66_v34 = vmul.f32 %v146_v23, %v60_v33 }
  0x9d   :  { %v68_v35 = vpack.c.bf16 %v66_v34, %v66_v34 }
  0x9f   :  { %71 = vst.msk [vmem:[#allocation2 + $0x4] sm:$0xf] %vm69_vm4, %v68_v35 }
  0xa6   :  { %v139_v36 = vld [vmem:[#allocation2] sm:$0xff] }
  0xa7   :  { %138 = vmatmul.msk.bf16.vlgmr.msra.gmra.mxu0 %vm28_vm0, %v139_v36 }
 0x124   :  { %v112_v38 = vpop.f32.mrf.mxu0 }
 0x125   :  { %v113_v39 = vadd.f32 %v147_v37, %v112_v38 }
 0x127   :  { %v117_v40 = vpack.c.bf16 %v113_v39, %v113_v39 }
 0x129   :  { %120 = vst.msk [vmem:[%s205_s4] sm:$0xf] %vm119_vm8, %v117_v40 }
 0x12c   :  { %v114_v41 = vpop.f32.mrf.mxu0 }
 0x12d   :  { %v115_v42 = vadd.f32 %v147_v37, %v114_v41 }
 0x12f   :  { %v118_v43 = vpack.c.bf16 %v115_v42, %v115_v42 }
 0x131   :  { %121 = vst.msk [vmem:[%s205_s4 + $0x4] sm:$0xf] %vm119_vm8, %v118_v43 }

// kernel: model_forward.13
= control target key start
LH: loop header
LB: loop body
LE: loop exit
PB: predicated region body
PF: predicated region fallthrough
CT: control target
= control target key end

     0   :  { %vm22_vm0 = vcmask 261120   ;;  %v120_v1 = vmov 0.0   ;;  %vm91_vm1 = vcmask 257024   ;;  %s172_s1 = inlined_call_operand.vmem [shape: bf16[32,32], index: 1, kind: input, shape index: {}]   ;;  %s173_s2 = inlined_call_operand.vmem [shape: f32[1,32], index: 2, kind: input, shape index: {}]   ;;  %s174_s0 = inlined_call_operand.vmem [shape: bf16[16,32], index: 0, kind: input, shape index: {}]   ;;  %s175_s3 = inlined_call_operand.vmem [shape: bf16[16,32], index: 3, kind: input, shape index: {}, may-alias: {3,4}]   ;;  %s176_s4 = inlined_call_operand.vmem [shape: bf16[16,32], index: 4, kind: output, shape index: {}, may-alias: {3,4}]  }
   0x1   :  { %v113_v0 = vld [vmem:[%s172_s1 + $0x8] sm:$0xff]  ;;  %23 = vst.msk [vmem:[#allocation2] sm:$0xff] %vm22_vm0, %v120_v1  ;;  %v112_v2 = vld [vmem:[%s172_s1] sm:$0xff] }
   0x2   :  { %24 = vst.msk [vmem:[#allocation2 + $0x8] sm:$0xff] %vm22_vm0, %v120_v1  ;;  %60 = vmatpush.bf16.msra.mxu0 %v113_v0  ;;  %v111_v3 = vld [vmem:[%s174_s0] sm:$0xff] }
   0x3   :  { %v115_v7 = vld [vmem:[%s175_s3] sm:$0xff]  }
   0x4   :  { %v119_v9 = vld [vmem:[%s173_s2] ss:$0 sm:$0xff]  ;;  %v116_v11 = vunpack.c.l.bf16 %v115_v7  ;;  %v117_v17 = vunpack.c.h.bf16 %v115_v7 }
   0x6   :  { %61 = vmatpush.bf16.msra.mxu0 %v112_v2 }
   0x8   :  { %v25_v4 = vld [vmem:[#allocation2] sm:$0xff] }
   0x9   :  { %110 = vmatmul.msk.bf16.vlgmr.msra.gmra.mxu0 %vm22_vm0, %v111_v3  ;;  %v26_v8 = vld [vmem:[#allocation2 + $0x8] sm:$0xff] }
  0x86   :  { %v63_v5 = vpop.f32.mrf.mxu0 }
  0x87   :  { %v68_v6 = vadd.f32 %v63_v5, %v25_v4 }
  0x89   :  { %70 = vst.msk [vmem:[#allocation2] sm:$0xff] %vm22_vm0, %v68_v6 }
  0x8e   :  { %v65_v10 = vpop.f32.mrf.mxu0 }
  0x8f   :  { %v69_v12 = vadd.f32 %v65_v10, %v26_v8 }
  0x90   :  { %v75_v13 = vld [vmem:[#allocation2] sm:$0xff] }
  0x91   :  { %v81_v14 = vadd.f32 %v119_v9, %v75_v13  ;;  %71 = vst.msk [vmem:[#allocation2 + $0x8] sm:$0xff] %vm22_vm0, %v69_v12 }
  0x93   :  { %v87_v15 = vadd.f32 %v116_v11, %v81_v14 }
  0x95   :  { %v89_v16 = vpack.c.bf16 %v87_v15, %v87_v15 }
  0x97   :  { %92 = vst.msk [vmem:[%s176_s4] sm:$0xf] %vm91_vm1, %v89_v16 }
  0x98   :  { %v76_v18 = vld [vmem:[#allocation2 + $0x8] sm:$0xff] }
  0x99   :  { %v82_v19 = vadd.f32 %v119_v9, %v76_v18 }
  0x9b   :  { %v88_v20 = vadd.f32 %v117_v17, %v82_v19 }
  0x9d   :  { %v90_v21 = vpack.c.bf16 %v88_v20, %v88_v20 }
  0x9f   :  { %93 = vst.msk [vmem:[%s176_s4 + $0x4] sm:$0xf] %vm91_vm1, %v90_v21 }

// kernel: model_forward.14
= control target key start
LH: loop header
LB: loop body
LE: loop exit
PB: predicated region body
PF: predicated region fallthrough
CT: control target
= control target key end

     0   :  { %vm28_vm0 = vcmask 261120   ;;  %vm69_vm4 = vcmask 257024   ;;  %s224_s0 = inlined_call_operand.vmem [shape: bf16[16,32], index: 0, kind: input, shape index: {}]   ;;  %s225_s1 = inlined_call_operand.vmem [shape: f32[1,32], index: 1, kind: input, shape index: {}]   ;;  %s226_s3 = inlined_call_operand.vmem [shape: f32[1,128], index: 3, kind: input, shape index: {}]   ;;  %s227_s2 = inlined_call_operand.vmem [shape: bf16[32,128], index: 2, kind: input, shape index: {}]   ;;  %s228_s4 = inlined_call_operand.vmem [shape: bf16[16,128], index: 4, kind: output, shape index: {}]  }
   0x1   :  { %v160_v0 = vld [vmem:[%s224_s0] sm:$0xff]   ;;  %v158_v10 = vld [vmem:[%s227_s2 + $0x8] sm:$0xff] }
   0x2   :  { %v161_v1 = vunpack.c.l.bf16 %v160_v0  ;;  %v162_v3 = vunpack.c.h.bf16 %v160_v0  ;;  %109 = vmatpush.bf16.msra.mxu0 %v158_v10  ;;  %v157_v11 = vld [vmem:[%s227_s2] sm:$0xff] }
   0x3   :  { %v168_v23 = vld [vmem:[%s225_s1] ss:$0 sm:$0xff] }
   0x4   :  { %v26_v2 = vmul.f32 %v161_v1, %v161_v1  ;;  %v27_v5 = vmul.f32 %v162_v3, %v162_v3  ;;  %v169_v37 = vld [vmem:[%s226_s3] ss:$0 sm:$0xff] }
   0x6   :  { %v29_v4 = vsel %vm28_vm0, %v26_v2, 0.0  ;;  %v32_v6 = vsel %vm28_vm0, %v27_v5, 0.0  ;;  %110 = vmatpush.bf16.msra.mxu0 %v157_v11 }
   0x7   :  { %30 = vadd.xlane.f32.xlu0 %v29_v4 }
   0xf   :  { %33 = vadd.xlane.f32.xlu0 %v32_v6 }
  0x7a   :  { %v31_v7 = vpop.xlane.xlu0 %30 }
  0x7b   :  { %v35_v8 = vmul.f32 0.03125, %v31_v7 }
  0x7d   :  { %v37_v9 = vadd.f32 1e-05, %v35_v8 }
  0x7f   :  { %170 = vrsqrt.f32 %v37_v9  ;;  %vm45_vm2 = vweird.f32 %v37_v9 }
  0x82   :  { %v34_v12 = vpop.xlane.xlu0 %33 }
  0x83   :  { %v36_v13 = vmul.f32 0.03125, %v34_v12 }
  0x85   :  { %v171_v14 = vpop.eup %170  ;;  %v38_v15 = vadd.f32 1e-05, %v36_v13 }
  0x86   :  { %v40_v16 = vmul.f32 %v171_v14, %v37_v9  ;;  %vm46_vm1 = vweird.f32 %v171_v14 }
  0x87   :  { %172 = vrsqrt.f32 %v38_v15  ;;  %vm47_vm3 = vmor %vm45_vm2, %vm46_vm1  ;;  %vm55_vm6 = vweird.f32 %v38_v15 }
  0x88   :  { %v41_v17 = vmul.f32 %v171_v14, %v40_v16 }
  0x8a   :  { %v42_v18 = vmul.f32 0.5, %v41_v17 }
  0x8c   :  { %v43_v19 = vsub.f32 1.5, %v42_v18 }
  0x8d   :  { %v173_v20 = vpop.eup %172 }
  0x8e   :  { %v44_v21 = vmul.f32 %v171_v14, %v43_v19  ;;  %v50_v22 = vmul.f32 %v173_v20, %v38_v15  ;;  %vm56_vm5 = vweird.f32 %v173_v20 }
  0x8f   :  { %vm57_vm7 = vmor %vm55_vm6, %vm56_vm5 }
  0x90   :  { %v48_v24 = vsel %vm47_vm3, %v171_v14, %v44_v21  ;;  %v51_v25 = vmul.f32 %v173_v20, %v50_v22 }
  0x91   :  { %v59_v26 = vmul.f32 %v161_v1, %v48_v24 }
  0x92   :  { %v52_v27 = vmul.f32 0.5, %v51_v25 }
  0x93   :  { %v65_v28 = vmul.f32 %v168_v23, %v59_v26 }
  0x94   :  { %v53_v29 = vsub.f32 1.5, %v52_v27 }
  0x95   :  { %v67_v30 = vpack.c.bf16 %v65_v28, %v65_v28 }
  0x96   :  { %v54_v31 = vmul.f32 %v173_v20, %v53_v29 }
  0x97   :  { %70 = vst.msk [vmem:[#allocation2] sm:$0xf] %vm69_vm4, %v67_v30 }
  0x98   :  { %v58_v32 = vsel %vm57_vm7, %v173_v20, %v54_v31 }
  0x99   :  { %v60_v33 = vmul.f32 %v162_v3, %v58_v32 }
  0x9b   :  { %v66_v34 = vmul.f32 %v168_v23, %v60_v33 }
  0x9d   :  { %v68_v35 = vpack.c.bf16 %v66_v34, %v66_v34 }
  0x9f   :  { %71 = vst.msk [vmem:[#allocation2 + $0x4] sm:$0xf] %vm69_vm4, %v68_v35 }
  0xa6   :  { %v156_v36 = vld [vmem:[#allocation2] sm:$0xff] }
  0xa7   :  { %155 = vmatmul.msk.bf16.vlgmr.msra.gmra.mxu0 %vm28_vm0, %v156_v36 }
 0x124   :  { %v112_v38 = vpop.f32.mrf.mxu0 }
 0x125   :  { %v113_v39 = vadd.f32 %v169_v37, %v112_v38 }
 0x127   :  { %v117_v40 = vmul.f32 %v113_v39, %v113_v39 }
 0x129   :  { %v119_v41 = vmul.f32 %v117_v40, %v113_v39 }
 0x12b   :  { %v121_v42 = vmul.f32 0.044715, %v119_v41 }
 0x12c   :  { %v114_v43 = vpop.f32.mrf.mxu0 }
 0x12d   :  { %v123_v44 = vadd.f32 %v121_v42, %v113_v39  ;;  %v115_v45 = vadd.f32 %v169_v37, %v114_v43 }
 0x12f   :  { %v125_v46 = vmul.f32 0.7978846, %v123_v44  ;;  %v118_v47 = vmul.f32 %v115_v45, %v115_v45 }
 0x131   :  { %v120_v48 = vmul.f32 %v118_v47, %v115_v45  ;;  %174 = vtanh.f32 %v125_v46 }
 0x133   :  { %v122_v49 = vmul.f32 0.044715, %v120_v48 }
 0x135   :  { %v124_v50 = vadd.f32 %v122_v49, %v115_v45 }
 0x137   :  { %v126_v51 = vmul.f32 0.7978846, %v124_v50  ;;  %v175_v52 = vpop.eup %174 }
 0x138   :  { %v129_v53 = vadd.f32 1.0, %v175_v52 }
 0x139   :  { %176 = vtanh.f32 %v126_v51 }
 0x13a   :  { %v131_v55 = vmul.f32 0.5, %v129_v53 }
 0x13c   :  { %v133_v58 = vmul.f32 %v131_v55, %v113_v39 }
 0x13f   :  { %v177_v54 = vpop.eup %176 }
 0x140   :  { %v130_v56 = vadd.f32 1.0, %v177_v54 }
 0x142   :  { %v132_v57 = vmul.f32 0.5, %v130_v56 }
 0x144   :  { %v134_v59 = vmul.f32 %v132_v57, %v115_v45 }
 0x146   :  { %v166_v60 = vpack.c.bf16 %v134_v59, %v133_v58 }
 0x148   :  { %167 = vst [vmem:[%s228_s4] sm:$0xff] %v166_v60  }

// kernel: model_forward.12
= control target key start
LH: loop header
LB: loop body
LE: loop exit
PB: predicated region body
PF: predicated region fallthrough
CT: control target
= control target key end

     0   :  { %vm36_vm0 = vcmask 64512   ;;  %v842_v24 = vlaneseq  ;;  %vm19_vm2 = vcmask 7168   ;;  %v1478_v34 = vmov -inf   ;;  %s1806_s1 = inlined_call_operand.vmem [shape: bf16[8,8,8], index: 1, kind: input, shape index: {}]   ;;  %s1807_s0 = inlined_call_operand.vmem [shape: bf16[8,8,8], index: 0, kind: input, shape index: {}]   ;;  %s1808_s2 = inlined_call_operand.vmem [shape: bf16[8,8,8], index: 2, kind: input, shape index: {}]   ;;  %s1809_s3 = inlined_call_operand.vmem [shape: bf16[8,8,8], index: 3, kind: output, shape index: {}]  }
   0x1   :  { %v672_v0 = vld [vmem:[%s1806_s1] sm:$0xf]  ;;  %v674_v1 = vld [vmem:[%s1806_s1 + $0x8] sm:$0xf]  ;;  %v675_v2 = vld [vmem:[%s1806_s1 + $0xc] sm:$0xf] }
   0x2   :  { %v685_v3 = vsel %vm36_vm0, %v672_v0, 0  ;;  %v723_v4 = vsel %vm36_vm0, %v674_v1, 0  ;;  %v742_v5 = vsel %vm36_vm0, %v675_v2, 0  ;;  %v678_v6 = vld [vmem:[%s1806_s1 + $0x18] sm:$0xf]  ;;  %v843_v25 = vshrl.u32 %v842_v24, 7 }
   0x3   :  { %694 = vmatpush.bf16.xpose.msra.mxu0 %v685_v3  ;;  %732 = vmatpush.bf16.xpose.msra.mxu2 %v723_v4  ;;  %v799_v7 = vsel %vm36_vm0, %v678_v6, 0  ;;  %v673_v8 = vld [vmem:[%s1806_s1 + $0x4] sm:$0xf]  ;;  %v679_v9 = vld [vmem:[%s1806_s1 + $0x1c] sm:$0xf]  ;;  %v848_v26 = vand.u32 127, %v842_v24 }
   0x4   :  { %751 = vmatpush.bf16.xpose.msra.mxu3 %v742_v5  ;;  %v704_v10 = vsel %vm36_vm0, %v673_v8, 0  ;;  %v818_v11 = vsel %vm36_vm0, %v679_v9, 0  ;;  %v677_v12 = vld [vmem:[%s1806_s1 + $0x14] sm:$0xf]  ;;  %v676_v13 = vld [vmem:[%s1806_s1 + $0x10] sm:$0xf] }
   0x5   :  { %713 = vmatpush.bf16.xpose.msra.mxu1 %v704_v10  ;;  %v664_v14 = vld [vmem:[%s1807_s0] sm:$0xf]  ;;  %v666_v15 = vld [vmem:[%s1807_s0 + $0x8] sm:$0xf]  ;;  %v780_v16 = vsel %vm36_vm0, %v677_v12, 0  ;;  %v761_v17 = vsel %vm36_vm0, %v676_v13, 0  ;;  %vm1565_vm1 = vcmp.ge.s32.totalorder %v843_v25, %v848_v26 }
   0x6   :  { %v667_v18 = vld [vmem:[%s1807_s0 + $0xc] sm:$0xf]  ;;  %v665_v19 = vld [vmem:[%s1807_s0 + $0x4] sm:$0xf]  ;;  %v670_v20 = vld [vmem:[%s1807_s0 + $0x18] sm:$0xf] }
   0x7   :  { %v668_v21 = vld [vmem:[%s1807_s0 + $0x10] sm:$0xf]  ;;  %v671_v22 = vld [vmem:[%s1807_s0 + $0x1c] sm:$0xf]  ;;  %v669_v23 = vld [vmem:[%s1807_s0 + $0x14] sm:$0xf] }
   0x8   :  { %20 = vst.msk [vmem:[#allocation2] sm:$0xff] %vm19_vm2, %v1478_v34  ;;  %v1479_v5 = vmov 0   ;;  %v1480_v6 = vmov 0.0   ;;  %vm1122_vm3 = vcmask 1043456   ;;  %vm1379_vm4 = vcmask 60416  }
   0x9   :  { %21 = vst.msk [vmem:[#allocation2 + $0x8] sm:$0xff] %vm19_vm2, %v1478_v34  ;;  %1429 = vset.pattern.permute.xlu1 %v1479_v5  ;;  %1427 = vset.pattern.permute.xlu2 %v1479_v5 }
   0xa   :  { %1408 = vmatmul.msk.bf16.vlgmr.msra.gmra.mxu0 %vm36_vm0, %v664_v14  ;;  %1410 = vmatmul.msk.bf16.vlgmr.msra.gmra.mxu2 %vm36_vm0, %v666_v15  ;;  %22 = vst.msk [vmem:[#allocation2 + $0x10] sm:$0xff] %vm19_vm2, %v1478_v34 }
   0xb   :  { %808 = vmatpush.bf16.xpose.msrb.mxu2 %v799_v7  ;;  %770 = vmatpush.bf16.xpose.msrb.mxu0 %v761_v17  ;;  %23 = vst.msk [vmem:[#allocation2 + $0x18] sm:$0xff] %vm19_vm2, %v1478_v34 }
   0xc   :  { %827 = vmatpush.bf16.xpose.msrb.mxu3 %v818_v11  ;;  %1409 = vmatmul.msk.bf16.vlgmr.msra.gmra.mxu1 %vm36_vm0, %v665_v19  ;;  %24 = vst.msk [vmem:[#allocation2 + $0x20] sm:$0xff] %vm19_vm2, %v1478_v34 }
   0xd   :  { %789 = vmatpush.bf16.xpose.msrb.mxu1 %v780_v16  ;;  %1411 = vmatmul.msk.bf16.vlgmr.msra.gmra.mxu3 %vm36_vm0, %v667_v18  ;;  %25 = vst.msk [vmem:[#allocation2 + $0x28] sm:$0xff] %vm19_vm2, %v1478_v34 }
   0xe   :  { %26 = vst.msk [vmem:[#allocation2 + $0x30] sm:$0xff] %vm19_vm2, %v1478_v34  ;;  %1428 = vset.pattern.permute.xlu0 %v1479_v5 }
   0xf   :  { %27 = vst.msk [vmem:[#allocation2 + $0x38] sm:$0xff] %vm19_vm2, %v1478_v34  ;;  %v862_v7 = vld [vmem:[#allocation2] sm:$0xff] }
  0x10   :  { %38 = vst.msk [vmem:[#allocation4 + $0x8] sm:$0xff] %vm36_vm0, %v1480_v6  ;;  %v863_v12 = vld [vmem:[#allocation2 + $0x8] sm:$0xff] }
  0x11   :  { %28 = vst.msk [vmem:[#allocation3] sm:$0xff] %vm19_vm2, %v1480_v6  ;;  %v864_v10 = vld [vmem:[#allocation2 + $0x10] sm:$0xff] }
  0x12   :  { %29 = vst.msk [vmem:[#allocation3 + $0x8] sm:$0xff] %vm19_vm2, %v1480_v6  ;;  %v865_v17 = vld [vmem:[#allocation2 + $0x18] sm:$0xff] }
  0x13   :  { %30 = vst.msk [vmem:[#allocation3 + $0x10] sm:$0xff] %vm19_vm2, %v1480_v6  ;;  %v866_v24 = vld [vmem:[#allocation2 + $0x20] sm:$0xff] }
  0x14   :  { %31 = vst.msk [vmem:[#allocation3 + $0x18] sm:$0xff] %vm19_vm2, %v1480_v6 }
  0x15   :  { %32 = vst.msk [vmem:[#allocation3 + $0x20] sm:$0xff] %vm19_vm2, %v1480_v6 }
  0x16   :  { %33 = vst.msk [vmem:[#allocation3 + $0x28] sm:$0xff] %vm19_vm2, %v1480_v6 }
  0x17   :  { %34 = vst.msk [vmem:[#allocation3 + $0x30] sm:$0xff] %vm19_vm2, %v1480_v6 }
  0x18   :  { %35 = vst.msk [vmem:[#allocation3 + $0x38] sm:$0xff] %vm19_vm2, %v1480_v6 }
  0x19   :  { %37 = vst.msk [vmem:[#allocation4] sm:$0xff] %vm36_vm0, %v1480_v6 }
  0x1a   :  { %1414 = vmatmul.msk.bf16.vlgmr.msrb.gmra.mxu2 %vm36_vm0, %v670_v20  ;;  %1412 = vmatmul.msk.bf16.vlgmr.msrb.gmra.mxu0 %vm36_vm0, %v668_v21  ;;  %39 = vst.msk [vmem:[#allocation4 + $0x10] sm:$0xff] %vm36_vm0, %v1480_v6  ;;  %v867_v21 = vld [vmem:[#allocation2 + $0x28] sm:$0xff] }
  0x1b   :  { %40 = vst.msk [vmem:[#allocation4 + $0x18] sm:$0xff] %vm36_vm0, %v1480_v6 }
  0x1c   :  { %1413 = vmatmul.msk.bf16.vlgmr.msrb.gmra.mxu1 %vm36_vm0, %v669_v23  ;;  %41 = vst.msk [vmem:[#allocation4 + $0x20] sm:$0xff] %vm36_vm0, %v1480_v6  ;;  %v868_v23 = vld [vmem:[#allocation2 + $0x30] sm:$0xff] }
  0x1d   :  { %1415 = vmatmul.msk.bf16.vlgmr.msrb.gmra.mxu3 %vm36_vm0, %v671_v22  ;;  %42 = vst.msk [vmem:[#allocation4 + $0x28] sm:$0xff] %vm36_vm0, %v1480_v6 }
  0x1e   :  { %43 = vst.msk [vmem:[#allocation4 + $0x30] sm:$0xff] %vm36_vm0, %v1480_v6 }
  0x1f   :  { %44 = vst.msk [vmem:[#allocation4 + $0x38] sm:$0xff] %vm36_vm0, %v1480_v6 }
  0x87   :  { %v696_v27 = vpop.f32.mrf.mxu0 }
  0x88   :  { %v833_v29 = vmul.f32 0.35355338, %v696_v27 }
  0x89   :  { %v715_v31 = vpop.f32.mrf.mxu1 }
  0x8a   :  { %v1571_v30 = vsel %vm1565_vm1, %v833_v29, -1e+30  ;;  %v834_v33 = vmul.f32 0.35355338, %v715_v31 }
  0x8b   :  { %v870_v32 = vsel %vm36_vm0, %v1571_v30, -inf }
  0x8c   :  { %871 = vmax.xlane.f32.xlu1 %v870_v32  ;;  %v1580_v38 = vsel %vm1565_vm1, %v834_v33, -1e+30 }
  0x8d   :  { %v734_v35 = vpop.f32.mrf.mxu2  ;;  %v873_v43 = vsel %vm36_vm0, %v1580_v38, -inf }
  0x8e   :  { %v835_v36 = vmul.f32 0.35355338, %v734_v35  ;;  %v1651_v35 = vld [vmem:[#allocation2 + $0x38] sm:$0xff] }
  0x8f   :  { %v698_v39 = vpop.f32.mrf.mxu0 }
  0x90   :  { %v753_v37 = vpop.f32.mrf.mxu3  ;;  %v1586_v41 = vsel %vm1565_vm1, %v835_v36, -1e+30 }
  0x91   :  { %v836_v40 = vmul.f32 0.35355338, %v753_v37  ;;  %v876_v42 = vsel %vm36_vm0, %v1586_v41, -inf  ;;  %v717_v44 = vpop.f32.mrf.mxu1 }
  0x92   :  { %877 = vmax.xlane.f32.xlu0 %v876_v42 }
  0x93   :  { %v1597_v45 = vsel %vm1565_vm1, %v836_v40, -1e+30 }
  0x94   :  { %874 = vmax.xlane.f32.xlu1 %v873_v43  ;;  %v879_v48 = vsel %vm36_vm0, %v1597_v45, -inf }
  0x95   :  { %v736_v46 = vpop.f32.mrf.mxu2 }
  0x97   :  { %v772_v49 = vpop.f32.mrf.mxu0 }
  0x98   :  { %v755_v47 = vpop.f32.mrf.mxu3  ;;  %v837_v50 = vmul.f32 0.35355338, %v772_v49 }
  0x99   :  { %v791_v51 = vpop.f32.mrf.mxu1 }
  0x9a   :  { %880 = vmax.xlane.f32.xlu0 %v879_v48  ;;  %v838_v52 = vmul.f32 0.35355338, %v791_v51  ;;  %v1603_v53 = vsel %vm1565_vm1, %v837_v50, -1e+30 }
  0x9b   :  { %v882_v59 = vsel %vm36_vm0, %v1603_v53, -inf }
  0x9c   :  { %v1607_v55 = vsel %vm1565_vm1, %v838_v52, -1e+30 }
  0x9d   :  { %v810_v54 = vpop.f32.mrf.mxu2  ;;  %v885_v58 = vsel %vm36_vm0, %v1607_v55, -inf }
  0x9e   :  { %v839_v56 = vmul.f32 0.35355338, %v810_v54  ;;  %886 = vmax.xlane.f32.xlu1 %v885_v58 }
  0x9f   :  { %v774_v60 = vpop.f32.mrf.mxu0 }
  0xa0   :  { %v829_v57 = vpop.f32.mrf.mxu3  ;;  %v1615_v62 = vsel %vm1565_vm1, %v839_v56, -1e+30 }
  0xa1   :  { %v840_v61 = vmul.f32 0.35355338, %v829_v57  ;;  %v888_v63 = vsel %vm36_vm0, %v1615_v62, -inf  ;;  %v793_v0 = vpop.f32.mrf.mxu1 }
  0xa2   :  { %889 = vmax.xlane.f32.xlu2 %v888_v63  ;;  %883 = vmax.xlane.f32.xlu0 %v882_v59  ;;  %v1113_v59 = vld [vmem:[%s1808_s2 + $0x8] sm:$0xf]  ;;  %v1117_v0 = vld [vmem:[%s1808_s2 + $0x18] sm:$0xf] }
  0xa3   :  { %v1621_v1 = vsel %vm1565_vm1, %v840_v61, -1e+30  ;;  %v1162_v60 = vsel %vm1122_vm3, %v1113_v59, 0  ;;  %v1112_v61 = vld [vmem:[%s1808_s2 + $0x4] sm:$0xf] }
  0xa4   :  { %v891_v4 = vsel %vm36_vm0, %v1621_v1, -inf  ;;  %1171 = vmatpush.bf16.msra.mxu2 %v1162_v60  ;;  %v1143_v63 = vsel %vm1122_vm3, %v1112_v61, 0 }
  0xa5   :  { %v812_v2 = vpop.f32.mrf.mxu2  ;;  %1152 = vmatpush.bf16.msra.mxu1 %v1143_v63 }
  0xa6   :  { %v1238_v2 = vsel %vm1122_vm3, %v1117_v0, 0 }
  0xa8   :  { %v831_v3 = vpop.f32.mrf.mxu3  ;;  %1247 = vmatpush.bf16.msrb.mxu2 %v1238_v2 }
  0xa9   :  { %v1111_v3 = vld [vmem:[%s1808_s2] sm:$0xf] }
  0xaa   :  { %892 = vmax.xlane.f32.xlu2 %v891_v4  ;;  %v1124_v4 = vsel %vm1122_vm3, %v1111_v3, 0 }
  0xab   :  { %1133 = vmatpush.bf16.msra.mxu0 %v1124_v4 }
  0xff   :  { %v872_v8 = vpop.xlane.xlu1 %871 }
 0x100   :  { %v894_v9 = vmax.f32 %v862_v7, %v872_v8 }
 0x102   :  { %1288 = vst.msk [vmem:[#allocation2] sm:$0xff] %vm19_vm2, %v894_v9  ;;  %928 = vperm.xlu1 %1429, %v894_v9   ;;  %v902_v43 = vsub.f32 %v862_v7, %v894_v9 }
 0x104   :  { %v910_v47 = vmul.f32 1.442695, %v902_v43 }
 0x105   :  { %v878_v11 = vpop.xlane.xlu0 %877 }
 0x106   :  { %v896_v13 = vmax.f32 %v864_v10, %v878_v11 }
 0x107   :  { %v875_v14 = vpop.xlane.xlu1 %874 }
 0x108   :  { %1290 = vst.msk [vmem:[#allocation2 + $0x10] sm:$0xff] %vm19_vm2, %v896_v13  ;;  %938 = vperm.xlu2 %1427, %v896_v13   ;;  %v895_v15 = vmax.f32 %v863_v12, %v875_v14  ;;  %v904_v16 = vsub.f32 %v864_v10, %v896_v13  ;;  %v1114_v10 = vld [vmem:[%s1808_s2 + $0xc] sm:$0xf] }
 0x109   :  { %v1181_v13 = vsel %vm1122_vm3, %v1114_v10, 0 }
 0x10a   :  { %1289 = vst.msk [vmem:[#allocation2 + $0x8] sm:$0xff] %vm19_vm2, %v895_v15  ;;  %v914_v18 = vmul.f32 1.442695, %v904_v16  ;;  %v903_v33 = vsub.f32 %v863_v12, %v895_v15  ;;  %1190 = vmatpush.bf16.msra.mxu3 %v1181_v13  ;;  %v992_v13 = vld [vmem:[#allocation3 + $0x10] sm:$0xff] }
 0x10c   :  { %1430 = vpow2.f32 %v914_v18  ;;  %v912_v36 = vmul.f32 1.442695, %v903_v33 }
 0x10d   :  { %v881_v19 = vpop.xlane.xlu0 %880 }
 0x10e   :  { %v897_v20 = vmax.f32 %v865_v17, %v881_v19 }
 0x110   :  { %1291 = vst.msk [vmem:[#allocation2 + $0x18] sm:$0xff] %vm19_vm2, %v897_v20  ;;  %933 = vperm.xlu2 %1427, %v895_v15   ;;  %943 = vperm.xlu0 %1428, %v897_v20   ;;  %v905_v49 = vsub.f32 %v865_v17, %v897_v20 }
 0x111   :  { %v887_v22 = vpop.xlane.xlu1 %886 }
 0x112   :  { %v899_v25 = vmax.f32 %v867_v21, %v887_v22  ;;  %v1646_v31 = vpop.eup %1430  ;;  %v916_v51 = vmul.f32 1.442695, %v905_v49 }
 0x114   :  { %1293 = vst.msk [vmem:[#allocation2 + $0x28] sm:$0xff] %vm19_vm2, %v899_v25  ;;  %v907_v40 = vsub.f32 %v867_v21, %v899_v25 }
 0x115   :  { %v890_v26 = vpop.xlane.xlu2 %889  ;;  %v884_v27 = vpop.xlane.xlu0 %883 }
 0x116   :  { %v900_v28 = vmax.f32 %v868_v23, %v890_v26  ;;  %v898_v29 = vmax.f32 %v866_v24, %v884_v27  ;;  %v920_v46 = vmul.f32 1.442695, %v907_v40 }
 0x118   :  { %1294 = vst.msk [vmem:[#allocation2 + $0x30] sm:$0xff] %vm19_vm2, %v900_v28  ;;  %958 = vperm.xlu2 %1427, %v900_v28   ;;  %1067 = vperm.xlu0 %1428, %v1646_v31   ;;  %v906_v32 = vsub.f32 %v866_v24, %v898_v29  ;;  %v908_v54 = vsub.f32 %v868_v23, %v900_v28 }
 0x119   :  { %1292 = vst.msk [vmem:[#allocation2 + $0x20] sm:$0xff] %vm19_vm2, %v898_v29 }
 0x11a   :  { %v918_v34 = vmul.f32 1.442695, %v906_v32  ;;  %v922_v56 = vmul.f32 1.442695, %v908_v54 }
 0x11c   :  { %1432 = vpow2.f32 %v918_v34 }
 0x11d   :  { %v893_v37 = vpop.xlane.xlu2 %892  ;;  %1434 = vpow2.f32 %v912_v36 }
 0x11e   :  { %v1654_v39 = vmax.f32 %v1651_v35, %v893_v37  ;;  %1436 = vpow2.f32 %v920_v46  ;;  %v1116_v37 = vld [vmem:[%s1808_s2 + $0x14] sm:$0xf] }
 0x11f   :  { %1438 = vpow2.f32 %v910_v47  ;;  %v1219_v46 = vsel %vm1122_vm3, %v1116_v37, 0 }
 0x120   :  { %v909_v42 = vsub.f32 %v1651_v35, %v1654_v39  ;;  %1295 = vst.msk [vmem:[#allocation2 + $0x38] sm:$0xff] %vm19_vm2, %v1654_v39  ;;  %963 = vperm.xlu1 %1429, %v1654_v39   ;;  %948 = vperm.xlu2 %1427, %v898_v29   ;;  %1440 = vpow2.f32 %v916_v51 }
 0x121   :  { %1442 = vpow2.f32 %v922_v56  ;;  %1228 = vmatpush.bf16.msrb.mxu1 %v1219_v46  ;;  %v993_v46 = vld [vmem:[#allocation3 + $0x18] sm:$0xff] }
 0x122   :  { %v1661_v44 = vpop.eup %1432 }
 0x123   :  { %1077 = vperm.xlu0 %1428, %v1661_v44   ;;  %v1664_v48 = vpop.eup %1434 }
 0x124   :  { %v1667_v50 = vpop.eup %1436 }
 0x125   :  { %v1669_v52 = vpop.eup %1438 }
 0x126   :  { %v1673_v57 = vpop.eup %1440 }
 0x127   :  { %v1676_v58 = vpop.eup %1442 }
 0x128   :  { %953 = vperm.xlu1 %1429, %v899_v25   ;;  %1062 = vperm.xlu2 %1427, %v1664_v48  }
 0x130   :  { %1057 = vperm.xlu1 %1429, %v1669_v52   ;;  %1082 = vperm.xlu2 %1427, %v1667_v50  }
 0x138   :  { %1072 = vperm.xlu1 %1429, %v1673_v57  }
 0x140   :  { %1087 = vperm.xlu1 %1429, %v1676_v58  }
 0x162   :  { %v939_v5 = vpop.permute.xlu2 %938 }
 0x163   :  { %v968_v6 = vsub.f32 %v1586_v41, %v939_v5  ;;  %v1115_v41 = vld [vmem:[%s1808_s2 + $0x10] sm:$0xf] }
 0x165   :  { %v978_v7 = vmul.f32 1.442695, %v968_v6 }
 0x167   :  { %1444 = vpow2.f32 %v978_v7 }
 0x16a   :  { %v934_v8 = vpop.permute.xlu2 %933 }
 0x16b   :  { %v967_v9 = vsub.f32 %v1580_v38, %v934_v8  ;;  %v1200_v38 = vsel %vm1122_vm3, %v1115_v41, 0  ;;  %v924_v8 = vmul.f32 1.442695, %v909_v42  ;;  %v991_v42 = vld [vmem:[#allocation3 + $0x8] sm:$0xff] }
 0x16c   :  { %1209 = vmatpush.bf16.msrb.mxu0 %v1200_v38  ;;  %v999_v38 = vmul.f32 %v1664_v48, %v991_v42 }
 0x16d   :  { %v1445_v11 = vpop.eup %1444  ;;  %v976_v12 = vmul.f32 1.442695, %v967_v9 }
 0x16e   :  { %v1105_v14 = vpack.c.bf16 %v1445_v11, %v1445_v11  ;;  %v1012_v15 = vsel %vm36_vm0, %v1445_v11, 0.0 }
 0x16f   :  { %1446 = vpow2.f32 %v976_v12  ;;  %1013 = vadd.xlane.f32.xlu1 %v1012_v15 }
 0x170   :  { %1418 = vmatmul.msk.bf16.vlgmr.msra.gmra.mxu2 %vm36_vm0, %v1105_v14  ;;  %v1000_v14 = vmul.f32 %v1646_v31, %v992_v13  ;;  %v990_v31 = vld [vmem:[#allocation3] sm:$0xff] }
 0x172   :  { %v959_v16 = vpop.permute.xlu2 %958 }
 0x173   :  { %v972_v17 = vsub.f32 %v1615_v62, %v959_v16  ;;  %v1118_v62 = vld [vmem:[%s1808_s2 + $0x1c] sm:$0xf] }
 0x174   :  { %v929_v18 = vpop.permute.xlu1 %928 }
 0x175   :  { %v1447_v19 = vpop.eup %1446  ;;  %v986_v20 = vmul.f32 1.442695, %v972_v17  ;;  %v966_v21 = vsub.f32 %v1571_v30, %v929_v18  ;;  %v1257_v30 = vsel %vm1122_vm3, %v1118_v62, 0 }
 0x176   :  { %v1104_v22 = vpack.c.bf16 %v1447_v19, %v1447_v19  ;;  %v1009_v23 = vsel %vm36_vm0, %v1447_v19, 0.0  ;;  %1266 = vmatpush.bf16.msrb.mxu3 %v1257_v30 }
 0x177   :  { %1448 = vpow2.f32 %v986_v20  ;;  %v974_v24 = vmul.f32 1.442695, %v966_v21  ;;  %1010 = vadd.xlane.f32.xlu2 %v1009_v23  ;;  %v1049_v20 = vld [vmem:[#allocation4 + $0x10] sm:$0xff]  ;;  %v1048_v21 = vld [vmem:[#allocation4 + $0x8] sm:$0xff] }
 0x178   :  { %1417 = vmatmul.msk.bf16.vlgmr.msra.gmra.mxu1 %vm36_vm0, %v1104_v22 }
 0x179   :  { %1450 = vpow2.f32 %v974_v24 }
 0x17a   :  { %v949_v25 = vpop.permute.xlu2 %948 }
 0x17b   :  { %v970_v26 = vsub.f32 %v1603_v53, %v949_v25  ;;  %v998_v25 = vmul.f32 %v1669_v52, %v990_v31 }
 0x17d   :  { %v1449_v27 = vpop.eup %1448  ;;  %v982_v28 = vmul.f32 1.442695, %v970_v26 }
 0x17e   :  { %v1109_v29 = vpack.c.bf16 %v1449_v27, %v1449_v27  ;;  %v1024_v61 = vsel %vm36_vm0, %v1449_v27, 0.0 }
 0x17f   :  { %v1451_v32 = vpop.eup %1450  ;;  %1452 = vpow2.f32 %v982_v28 }
 0x180   :  { %v1103_v33 = vpack.c.bf16 %v1451_v32, %v1451_v32  ;;  %1422 = vmatmul.msk.bf16.vlgmr.msrb.gmra.mxu2 %vm36_vm0, %v1109_v29  ;;  %v1006_v34 = vsel %vm36_vm0, %v1451_v32, 0.0  ;;  %v994_v32 = vld [vmem:[#allocation3 + $0x20] sm:$0xff] }
 0x181   :  { %1007 = vadd.xlane.f32.xlu0 %v1006_v34  ;;  %v1047_v34 = vld [vmem:[#allocation4] sm:$0xff]  ;;  %v1002_v52 = vmul.f32 %v1661_v44, %v994_v32 }
 0x182   :  { %1416 = vmatmul.msk.bf16.vlgmr.msra.gmra.mxu0 %vm36_vm0, %v1103_v33  ;;  %v944_v53 = vpop.permute.xlu0 %943  ;;  %v1063_v11 = vpop.permute.xlu2 %1062 }
 0x183   :  { %v969_v36 = vsub.f32 %v1597_v45, %v944_v53  ;;  %v1096_v26 = vmul.f32 %v1063_v11, %v1048_v21  ;;  %v997_v11 = vld [vmem:[#allocation3 + $0x38] sm:$0xff] }
 0x185   :  { %v1453_v40 = vpop.eup %1452  ;;  %v980_v43 = vmul.f32 1.442695, %v969_v36 }
 0x186   :  { %v1018_v47 = vsel %vm36_vm0, %v1453_v40, 0.0  ;;  %v1107_v56 = vpack.c.bf16 %v1453_v40, %v1453_v40 }
 0x187   :  { %1454 = vpow2.f32 %v980_v43 }
 0x189   :  { %1019 = vadd.xlane.f32.xlu0 %v1018_v47 }
 0x18a   :  { %v1744_v15 = vpop.permute.xlu2 %1082  ;;  %v1068_v39 = vpop.permute.xlu0 %1067 }
 0x18b   :  { %v1097_v22 = vmul.f32 %v1068_v39, %v1049_v20 }
 0x18d   :  { %v1455_v49 = vpop.eup %1454 }
 0x18e   :  { %v1106_v51 = vpack.c.bf16 %v1455_v49, %v1455_v49  ;;  %v1015_v54 = vsel %vm36_vm0, %v1455_v49, 0.0  ;;  %v1053_v49 = vld [vmem:[#allocation4 + $0x30] sm:$0xff] }
 0x18f   :  { %1016 = vadd.xlane.f32.xlu2 %v1015_v54 }
 0x190   :  { %1419 = vmatmul.msk.bf16.vlgmr.msra.gmra.mxu3 %vm36_vm0, %v1106_v51 }
 0x192   :  { %v964_v45 = vpop.permute.xlu1 %963  ;;  %1420 = vmatmul.msk.bf16.vlgmr.msrb.gmra.mxu0 %vm36_vm0, %v1107_v56  ;;  %v1001_v56 = vmul.f32 %v1673_v57, %v993_v46 }
 0x193   :  { %v973_v59 = vsub.f32 %v1621_v1, %v964_v45 }
 0x195   :  { %v988_v60 = vmul.f32 1.442695, %v973_v59  ;;  %v1748_v18 = vpop.permute.xlu0 %1077 }
 0x197   :  { %1456 = vpow2.f32 %v988_v60  ;;  %1025 = vadd.xlane.f32.xlu2 %v1024_v61 }
 0x19a   :  { %v954_v63 = vpop.permute.xlu1 %953 }
 0x19b   :  { %v971_v0 = vsub.f32 %v1607_v55, %v954_v63 }
 0x19d   :  { %v1457_v2 = vpop.eup %1456  ;;  %v984_v3 = vmul.f32 1.442695, %v971_v0  ;;  %v996_v0 = vld [vmem:[#allocation3 + $0x30] sm:$0xff] }
 0x19e   :  { %v1110_v4 = vpack.c.bf16 %v1457_v2, %v1457_v2  ;;  %v1027_v5 = vsel %vm36_vm0, %v1457_v2, 0.0 }
 0x19f   :  { %1458 = vpow2.f32 %v984_v3  ;;  %1028 = vadd.xlane.f32.xlu0 %v1027_v5  ;;  %v1051_v5 = vld [vmem:[#allocation4 + $0x20] sm:$0xff] }
 0x1a0   :  { %1423 = vmatmul.msk.bf16.vlgmr.msrb.gmra.mxu3 %vm36_vm0, %v1110_v4  ;;  %1460 = vpow2.f32 %v924_v8  ;;  %v1004_v4 = vmul.f32 %v1676_v58, %v996_v0 }
 0x1a2   :  { %v1058_v9 = vpop.permute.xlu1 %1057 }
 0x1a3   :  { %v1095_v43 = vmul.f32 %v1058_v9, %v1047_v34  ;;  %v1099_v9 = vmul.f32 %v1748_v18, %v1051_v5  ;;  %v995_v18 = vld [vmem:[#allocation3 + $0x28] sm:$0xff] }
 0x1a5   :  { %v1459_v6 = vpop.eup %1458 }
 0x1a6   :  { %v1108_v7 = vpack.c.bf16 %v1459_v6, %v1459_v6  ;;  %v1021_v1 = vsel %vm36_vm0, %v1459_v6, 0.0  ;;  %v1738_v55 = vpop.eup %1460 }
 0x1a7   :  { %1022 = vadd.xlane.f32.xlu1 %v1021_v1 }
 0x1a8   :  { %1421 = vmatmul.msk.bf16.vlgmr.msrb.gmra.mxu1 %vm36_vm0, %v1108_v7 }
 0x1aa   :  { %v1741_v10 = vpop.permute.xlu1 %1072 }
 0x1b2   :  { %v1088_v12 = vpop.permute.xlu1 %1087 }
 0x1b3   :  { %1092 = vperm.xlu0 %1428, %v1738_v55   ;;  %v1101_v45 = vmul.f32 %v1088_v12, %v1053_v49  ;;  %v1050_v12 = vld [vmem:[#allocation4 + $0x18] sm:$0xff] }
 0x1b4   :  { %v1098_v58 = vmul.f32 %v1741_v10, %v1050_v12 }
 0x1e2   :  { %v1014_v41 = vpop.xlane.xlu1 %1013 }
 0x1e3   :  { %v1032_v35 = vadd.f32 %v1014_v41, %v1000_v14  ;;  %v1005_v41 = vmul.f32 %v1738_v55, %v997_v11  ;;  %v1003_v55 = vmul.f32 %v1667_v50, %v995_v18 }
 0x1e5   :  { %1041 = vst.msk [vmem:[#allocation3 + $0x10] sm:$0xff] %vm19_vm2, %v1032_v35 }
 0x1ea   :  { %v1011_v16 = vpop.xlane.xlu2 %1010 }
 0x1eb   :  { %v1031_v17 = vadd.f32 %v1011_v16, %v999_v38 }
 0x1ec   :  { %v1309_v19 = vld [vmem:[#allocation3 + $0x10] sm:$0xff] }
 0x1ed   :  { %1040 = vst.msk [vmem:[#allocation3 + $0x8] sm:$0xff] %vm19_vm2, %v1031_v17  ;;  %1462 = vrcp.f32 %v1309_v19 }
 0x1f3   :  { %v1463_v23 = vpop.eup %1462  ;;  %v1173_v24 = vpop.f32.mrf.mxu2 }
 0x1f4   :  { %v1274_v62 = vadd.f32 %v1173_v24, %v1097_v22  ;;  %1335 = vperm.xlu0 %1428, %v1463_v23   ;;  %v1008_v48 = vpop.xlane.xlu0 %1007  ;;  %v1308_v27 = vld [vmem:[#allocation3 + $0x8] sm:$0xff] }
 0x1f5   :  { %v1030_v28 = vadd.f32 %v1008_v48, %v998_v25  ;;  %v1154_v30 = vpop.f32.mrf.mxu1  ;;  %1464 = vrcp.f32 %v1308_v27  ;;  %v1052_v23 = vld [vmem:[#allocation4 + $0x28] sm:$0xff] }
 0x1f6   :  { %1282 = vst.msk [vmem:[#allocation4 + $0x10] sm:$0xff] %vm36_vm0, %v1274_v62  ;;  %v1273_v29 = vadd.f32 %v1154_v30, %v1096_v26  ;;  %v1054_v26 = vld [vmem:[#allocation4 + $0x38] sm:$0xff]  ;;  %v1100_v62 = vmul.f32 %v1744_v15, %v1052_v23 }
 0x1f7   :  { %1039 = vst.msk [vmem:[#allocation3] sm:$0xff] %vm19_vm2, %v1030_v28 }
 0x1f8   :  { %1281 = vst.msk [vmem:[#allocation4 + $0x8] sm:$0xff] %vm36_vm0, %v1273_v29 }
 0x1fb   :  { %v1465_v33 = vpop.eup %1464  ;;  %v1175_v53 = vpop.f32.mrf.mxu2 }
 0x1fc   :  { %1330 = vperm.xlu1 %1429, %v1465_v33   ;;  %v1020_v36 = vpop.xlane.xlu0 %1019 }
 0x1fd   :  { %v1034_v37 = vadd.f32 %v1020_v36, %v1002_v52  ;;  %v1156_v40 = vpop.f32.mrf.mxu1 }
 0x1fe   :  { %v1307_v47 = vld [vmem:[#allocation3] sm:$0xff] }
 0x1ff   :  { %1043 = vst.msk [vmem:[#allocation3 + $0x20] sm:$0xff] %vm19_vm2, %v1034_v37  ;;  %v1135_v51 = vpop.f32.mrf.mxu0  ;;  %1466 = vrcp.f32 %v1307_v47  ;;  %v1301_v37 = vld [vmem:[#allocation4 + $0x10] sm:$0xff]  ;;  %v1300_v47 = vld [vmem:[#allocation4 + $0x8] sm:$0xff] }
 0x200   :  { %v1272_v54 = vadd.f32 %v1135_v51, %v1095_v43 }
 0x202   :  { %1280 = vst.msk [vmem:[#allocation4] sm:$0xff] %vm36_vm0, %v1272_v54  ;;  %v1017_v59 = vpop.xlane.xlu2 %1016 }
 0x203   :  { %v1033_v44 = vadd.f32 %v1017_v59, %v1001_v56  ;;  %v1249_v60 = vpop.f32.mrf.mxu2 }
 0x204   :  { %v1278_v61 = vadd.f32 %v1249_v60, %v1101_v45 }
 0x205   :  { %v1467_v63 = vpop.eup %1466  ;;  %1042 = vst.msk [vmem:[#allocation3 + $0x18] sm:$0xff] %vm19_vm2, %v1033_v44 }
 0x206   :  { %1286 = vst.msk [vmem:[#allocation4 + $0x30] sm:$0xff] %vm36_vm0, %v1278_v61  ;;  %1325 = vperm.xlu2 %1427, %v1467_v63   ;;  %v1311_v2 = vld [vmem:[#allocation3 + $0x20] sm:$0xff] }
 0x207   :  { %v1137_v3 = vpop.f32.mrf.mxu0  ;;  %1468 = vrcp.f32 %v1311_v2 }
 0x209   :  { %v1299_v52 = vld [vmem:[#allocation4] sm:$0xff] }
 0x20a   :  { %v1026_v57 = vpop.xlane.xlu2 %1025 }
 0x20b   :  { %v1036_v6 = vadd.f32 %v1026_v57, %v1004_v4  ;;  %v1251_v7 = vpop.f32.mrf.mxu2 }
 0x20c   :  { %v1310_v1 = vld [vmem:[#allocation3 + $0x18] sm:$0xff] }
 0x20d   :  { %v1469_v8 = vpop.eup %1468  ;;  %1045 = vst.msk [vmem:[#allocation3 + $0x30] sm:$0xff] %vm19_vm2, %v1036_v6  ;;  %1470 = vrcp.f32 %v1310_v1  ;;  %v1305_v60 = vld [vmem:[#allocation4 + $0x30] sm:$0xff] }
 0x20e   :  { %1345 = vperm.xlu1 %1429, %v1469_v8  }
 0x20f   :  { %v1211_v13 = vpop.f32.mrf.mxu0 }
 0x210   :  { %v1276_v14 = vadd.f32 %v1211_v13, %v1099_v9 }
 0x212   :  { %1284 = vst.msk [vmem:[#allocation4 + $0x20] sm:$0xff] %vm36_vm0, %v1276_v14  ;;  %v1029_v35 = vpop.xlane.xlu0 %1028 }
 0x213   :  { %v1471_v39 = vpop.eup %1470  ;;  %v1037_v42 = vadd.f32 %v1029_v35, %v1005_v41  ;;  %v1192_v38 = vpop.f32.mrf.mxu3 }
 0x214   :  { %v1275_v16 = vadd.f32 %v1192_v38, %v1098_v58  ;;  %1340 = vperm.xlu2 %1427, %v1471_v39   ;;  %v1313_v17 = vld [vmem:[#allocation3 + $0x30] sm:$0xff] }
 0x215   :  { %1046 = vst.msk [vmem:[#allocation3 + $0x38] sm:$0xff] %vm19_vm2, %v1037_v42  ;;  %1472 = vrcp.f32 %v1313_v17 }
 0x216   :  { %1283 = vst.msk [vmem:[#allocation4 + $0x18] sm:$0xff] %vm36_vm0, %v1275_v16 }
 0x217   :  { %v1213_v19 = vpop.f32.mrf.mxu0 }
 0x219   :  { %v1303_v3 = vld [vmem:[#allocation4 + $0x20] sm:$0xff] }
 0x21a   :  { %v1023_v20 = vpop.xlane.xlu1 %1022 }
 0x21b   :  { %v1473_v10 = vpop.eup %1472  ;;  %v1035_v31 = vadd.f32 %v1023_v20, %v1003_v55  ;;  %v1194_v21 = vpop.f32.mrf.mxu3 }
 0x21c   :  { %1355 = vperm.xlu2 %1427, %v1473_v10   ;;  %v1314_v22 = vld [vmem:[#allocation3 + $0x38] sm:$0xff] }
 0x21d   :  { %1044 = vst.msk [vmem:[#allocation3 + $0x28] sm:$0xff] %vm19_vm2, %v1035_v31  ;;  %1474 = vrcp.f32 %v1314_v22  ;;  %v1302_v51 = vld [vmem:[#allocation4 + $0x18] sm:$0xff] }
 0x223   :  { %v1475_v24 = vpop.eup %1474  ;;  %v1268_v25 = vpop.f32.mrf.mxu3 }
 0x224   :  { %1360 = vperm.xlu1 %1429, %v1475_v24   ;;  %v1312_v48 = vld [vmem:[#allocation3 + $0x28] sm:$0xff] }
 0x225   :  { %v1230_v27 = vpop.f32.mrf.mxu1  ;;  %v1093_v28 = vpop.permute.xlu0 %1092  ;;  %1476 = vrcp.f32 %v1312_v48 }
 0x226   :  { %v1277_v50 = vadd.f32 %v1230_v27, %v1100_v62  ;;  %v1102_v30 = vmul.f32 %v1093_v28, %v1054_v26 }
 0x228   :  { %1285 = vst.msk [vmem:[#allocation4 + $0x28] sm:$0xff] %vm36_vm0, %v1277_v50  ;;  %v1279_v29 = vadd.f32 %v1268_v25, %v1102_v30 }
 0x22a   :  { %1287 = vst.msk [vmem:[#allocation4 + $0x38] sm:$0xff] %vm36_vm0, %v1279_v29 }
 0x22b   :  { %v1477_v32 = vpop.eup %1476  ;;  %v1270_v33 = vpop.f32.mrf.mxu3 }
 0x22c   :  { %1350 = vperm.xlu0 %1428, %v1477_v32  }
 0x22d   :  { %v1232_v34 = vpop.f32.mrf.mxu1 }
 0x22f   :  { %v1304_v8 = vld [vmem:[#allocation4 + $0x28] sm:$0xff] }
 0x231   :  { %v1306_v6 = vld [vmem:[#allocation4 + $0x38] sm:$0xff] }
 0x260   :  { %v1326_v53 = vpop.permute.xlu2 %1325 }
 0x261   :  { %v1363_v36 = vmul.f32 %v1326_v53, %v1299_v52 }
 0x263   :  { %v1371_v15 = vpack.c.bf16 %v1363_v36, %v1363_v36 }
 0x265   :  { %1380 = vst.msk [vmem:[%s1809_s3] sm:$0xf] %vm1379_vm4, %v1371_v15 }
 0x266   :  { %v1336_v40 = vpop.permute.xlu0 %1335 }
 0x267   :  { %v1365_v43 = vmul.f32 %v1336_v40, %v1301_v37 }
 0x269   :  { %v1373_v46 = vpack.c.bf16 %v1365_v43, %v1365_v43 }
 0x26b   :  { %1382 = vst.msk [vmem:[%s1809_s3 + $0x8] sm:$0xf] %vm1379_vm4, %v1373_v46 }
 0x26e   :  { %v1331_v49 = vpop.permute.xlu1 %1330  ;;  %v1341_v54 = vpop.permute.xlu2 %1340 }
 0x26f   :  { %v1364_v56 = vmul.f32 %v1331_v49, %v1300_v47  ;;  %v1366_v45 = vmul.f32 %v1341_v54, %v1302_v51 }
 0x271   :  { %v1372_v59 = vpack.c.bf16 %v1364_v56, %v1364_v56  ;;  %v1374_v44 = vpack.c.bf16 %v1366_v45, %v1366_v45 }
 0x273   :  { %1381 = vst.msk [vmem:[%s1809_s3 + $0x4] sm:$0xf] %vm1379_vm4, %v1372_v59 }
 0x274   :  { %1383 = vst.msk [vmem:[%s1809_s3 + $0xc] sm:$0xf] %vm1379_vm4, %v1374_v44 }
 0x276   :  { %v1356_v61 = vpop.permute.xlu2 %1355 }
 0x277   :  { %v1369_v63 = vmul.f32 %v1356_v61, %v1305_v60 }
 0x279   :  { %v1377_v0 = vpack.c.bf16 %v1369_v63, %v1369_v63 }
 0x27b   :  { %1386 = vst.msk [vmem:[%s1809_s3 + $0x18] sm:$0xf] %vm1379_vm4, %v1377_v0 }
 0x280   :  { %v1346_v2 = vpop.permute.xlu1 %1345 }
 0x281   :  { %v1367_v4 = vmul.f32 %v1346_v2, %v1303_v3 }
 0x283   :  { %v1375_v57 = vpack.c.bf16 %v1367_v4, %v1367_v4 }
 0x285   :  { %1384 = vst.msk [vmem:[%s1809_s3 + $0x10] sm:$0xf] %vm1379_vm4, %v1375_v57 }
 0x296   :  { %v1361_v5 = vpop.permute.xlu1 %1360 }
 0x297   :  { %v1370_v7 = vmul.f32 %v1361_v5, %v1306_v6 }
 0x299   :  { %v1378_v1 = vpack.c.bf16 %v1370_v7, %v1370_v7 }
 0x29b   :  { %1387 = vst.msk [vmem:[%s1809_s3 + $0x1c] sm:$0xf] %vm1379_vm4, %v1378_v1 }
 0x29e   :  { %v1351_v9 = vpop.permute.xlu0 %1350 }
 0x29f   :  { %v1368_v11 = vmul.f32 %v1351_v9, %v1304_v8 }
 0x2a1   :  { %v1376_v12 = vpack.c.bf16 %v1368_v11, %v1368_v11 }
 0x2a3   :  { %1385 = vst.msk [vmem:[%s1809_s3 + $0x14] sm:$0xf] %vm1379_vm4, %v1376_v12 }

// kernel: model_forward.21
= control target key start
LH: loop header
LB: loop body
LE: loop exit
PB: predicated region body
PF: predicated region fallthrough
CT: control target
= control target key end

     0   :  { %s243_s0 = inlined_call_operand.vmem [shape: bf16[16,32], index: 0, kind: input, shape index: {}]   ;;  %s244_s1 = inlined_call_operand.vmem [shape: f32[1,32], index: 1, kind: input, shape index: {}]   ;;  %s245_s2 = inlined_call_operand.vmem [shape: bf16[32,64], index: 2, kind: input, shape index: {}]   ;;  %s246_s3 = inlined_call_operand.vmem [shape: f32[1,64], index: 3, kind: input, shape index: {}]   ;;  %s247_s4 = inlined_call_operand.hbm [shape: f32[16,64], index: 4, kind: output, shape index: {}]  }
   0x1   :  { %v156_v0 = vld [vmem:[%s243_s0] sm:$0xff]  }
   0x2   :  { %v157_v1 = vunpack.c.l.bf16 %v156_v0 }
   0x3   :  { %9 = vsyncpa [#allocation4], 0  ;;  %vm29_vm0 = vcmask 261120   ;;  %v158_v3 = vunpack.c.h.bf16 %v156_v0  ;;  %v154_v10 = vld [vmem:[%s245_s2 + $0x8] sm:$0xff]  ;;  %v153_v11 = vld [vmem:[%s245_s2] sm:$0xff]  ;;  %vm70_vm4 = vcmask 257024  }
   0x4   :  { %v27_v2 = vmul.f32 %v157_v1, %v157_v1  ;;  %110 = vmatpush.bf16.msra.mxu0 %v154_v10  ;;  %v162_v23 = vld [vmem:[%s244_s1] ss:$0 sm:$0xff]  ;;  %vm118_vm8 = vcmask 523264   ;;  %s194_s22 = smov [#allocation3]   ;;  %s127_s26 = sshll.u32 %s247_s4, 4  ;;  %s128_s26 = int_to_ptr.hbm [resolvable:$true] %s127_s26 }
   0x5   :  { %v28_v5 = vmul.f32 %v158_v3, %v158_v3  ;;  %v163_v37 = vld [vmem:[%s246_s3] ss:$0 sm:$0xff]  ;;  %s125_s23 = sshll.u32 %s194_s22, 4  ;;  %s195_s27 = smov 128   ;;  %s126_s23 = int_to_ptr.vmem [resolvable:$true] %s125_s23 }
   0x6   :  { %v30_v4 = vsel %vm29_vm0, %v27_v2, 0.0  ;;  %s196_s28 = smov 8  }
   0x7   :  { %31 = vadd.xlane.f32.xlu0 %v30_v4  ;;  %v33_v6 = vsel %vm29_vm0, %v28_v5, 0.0 }
   0x8   :  { %111 = vmatpush.bf16.msra.mxu0 %v153_v11 }
   0xf   :  { %34 = vadd.xlane.f32.xlu0 %v33_v6 }
  0x7a   :  { %v32_v7 = vpop.xlane.xlu0 %31 }
  0x7b   :  { %v36_v8 = vmul.f32 0.03125, %v32_v7 }
  0x7d   :  { %v38_v9 = vadd.f32 1e-05, %v36_v8 }
  0x7f   :  { %164 = vrsqrt.f32 %v38_v9  ;;  %vm46_vm2 = vweird.f32 %v38_v9 }
  0x82   :  { %v35_v12 = vpop.xlane.xlu0 %34 }
  0x83   :  { %v37_v13 = vmul.f32 0.03125, %v35_v12 }
  0x85   :  { %v165_v14 = vpop.eup %164  ;;  %v39_v15 = vadd.f32 1e-05, %v37_v13 }
  0x86   :  { %v41_v16 = vmul.f32 %v165_v14, %v38_v9  ;;  %vm47_vm1 = vweird.f32 %v165_v14 }
  0x87   :  { %166 = vrsqrt.f32 %v39_v15  ;;  %vm48_vm3 = vmor %vm46_vm2, %vm47_vm1  ;;  %vm56_vm6 = vweird.f32 %v39_v15 }
  0x88   :  { %v42_v17 = vmul.f32 %v165_v14, %v41_v16 }
  0x8a   :  { %v43_v18 = vmul.f32 0.5, %v42_v17 }
  0x8c   :  { %v44_v19 = vsub.f32 1.5, %v43_v18 }
  0x8d   :  { %v167_v20 = vpop.eup %166 }
  0x8e   :  { %v45_v21 = vmul.f32 %v165_v14, %v44_v19  ;;  %v51_v22 = vmul.f32 %v167_v20, %v39_v15  ;;  %vm57_vm5 = vweird.f32 %v167_v20 }
  0x8f   :  { %vm58_vm7 = vmor %vm56_vm6, %vm57_vm5 }
  0x90   :  { %v49_v24 = vsel %vm48_vm3, %v165_v14, %v45_v21  ;;  %v52_v25 = vmul.f32 %v167_v20, %v51_v22 }
  0x91   :  { %v60_v26 = vmul.f32 %v157_v1, %v49_v24 }
  0x92   :  { %v53_v27 = vmul.f32 0.5, %v52_v25 }
  0x93   :  { %v66_v28 = vmul.f32 %v162_v23, %v60_v26 }
  0x94   :  { %v54_v29 = vsub.f32 1.5, %v53_v27 }
  0x95   :  { %v68_v30 = vpack.c.bf16 %v66_v28, %v66_v28 }
  0x96   :  { %v55_v31 = vmul.f32 %v167_v20, %v54_v29 }
  0x97   :  { %71 = vst.msk [vmem:[#allocation2] sm:$0xf] %vm70_vm4, %v68_v30 }
  0x98   :  { %v59_v32 = vsel %vm58_vm7, %v167_v20, %v55_v31 }
  0x99   :  { %v61_v33 = vmul.f32 %v158_v3, %v59_v32 }
  0x9b   :  { %v67_v34 = vmul.f32 %v162_v23, %v61_v33 }
  0x9d   :  { %v69_v35 = vpack.c.bf16 %v67_v34, %v67_v34 }
  0x9f   :  { %72 = vst.msk [vmem:[#allocation2 + $0x4] sm:$0xf] %vm70_vm4, %v69_v35 }
  0xa6   :  { %v152_v36 = vld [vmem:[#allocation2] sm:$0xff] }
  0xa7   :  { %151 = vmatmul.msk.bf16.vlgmr.msra.gmra.mxu0 %vm29_vm0, %v152_v36 }
 0x124   :  { %v113_v38 = vpop.f32.mrf.mxu0 }
 0x125   :  { %v114_v39 = vadd.f32 %v163_v37, %v113_v38 }
 0x127   :  { %119 = vst.msk [vmem:[#allocation3] sm:$0xff] %vm118_vm8, %v114_v39 }
 0x12c   :  { %v115_v40 = vpop.f32.mrf.mxu0 }
 0x12d   :  { %v116_v41 = vadd.f32 %v163_v37, %v115_v40 }
 0x12f   :  { %120 = vst.msk [vmem:[#allocation3 + $0x8] sm:$0xff] %vm118_vm8, %v116_v41 }
 0x130   :  { %133 = dma.vmem_to_hbm [thread:$0]  %s126_s23, 256, %s128_s26, [#allocation4], %s195_s27, %s195_s27, %s196_s28  }
 0x131   :  { %192 = dma.done.wait [#allocation4], 256  }
 0x132   :  { %193 = vsyncadd [#allocation4], 4294967040 }
 0x133   :  { %138 = vsyncpa [#allocation4], 1 }

// kernel: model_forward.15
= control target key start
LH: loop header
LB: loop body
LE: loop exit
PB: predicated region body
PF: predicated region fallthrough
CT: control target
= control target key end

     0   :  { %vm21_vm0 = vcmask 261120   ;;  %v194_v2 = vmov 0.0   ;;  %vm136_vm1 = vcmask 257024   ;;  %s263_s1 = inlined_call_operand.vmem [shape: bf16[128,32], index: 1, kind: input, shape index: {}]   ;;  %s264_s2 = inlined_call_operand.vmem [shape: f32[1,32], index: 2, kind: input, shape index: {}]   ;;  %s265_s0 = inlined_call_operand.vmem [shape: bf16[16,128], index: 0, kind: input, shape index: {}]   ;;  %s266_s3 = inlined_call_operand.vmem [shape: bf16[16,32], index: 3, kind: input, shape index: {}, may-alias: {3,4}]   ;;  %s267_s4 = inlined_call_operand.vmem [shape: bf16[16,32], index: 4, kind: output, shape index: {}, may-alias: {3,4}]  }
   0x1   :  { %v187_v0 = vld [vmem:[%s263_s1 + $0x38] sm:$0xff]  ;;  %v186_v1 = vld [vmem:[%s263_s1 + $0x30] sm:$0xff]  ;;  %22 = vst.msk [vmem:[#allocation2] sm:$0xff] %vm21_vm0, %v194_v2  ;;  %v185_v3 = vld [vmem:[%s263_s1 + $0x28] sm:$0xff] }
   0x2   :  { %98 = vmatpush.bf16.msra.mxu0 %v187_v0  ;;  %23 = vst.msk [vmem:[#allocation2 + $0x8] sm:$0xff] %vm21_vm0, %v194_v2  ;;  %v184_v4 = vld [vmem:[%s263_s1 + $0x20] sm:$0xff]  ;;  %v183_v5 = vld [vmem:[%s263_s1 + $0x18] sm:$0xff]  ;;  %v182_v6 = vld [vmem:[%s263_s1 + $0x10] sm:$0xff] }
   0x3   :  { %v181_v7 = vld [vmem:[%s263_s1 + $0x8] sm:$0xff]  ;;  %v180_v8 = vld [vmem:[%s263_s1] sm:$0xff] }
   0x4   :  { %v179_v9 = vld [vmem:[%s265_s0] sm:$0xff] }
   0x5   :  { %v189_v13 = vld [vmem:[%s266_s3] sm:$0xff]  }
   0x6   :  { %99 = vmatpush.bf16.msra.mxu0 %v186_v1  ;;  %v193_v15 = vld [vmem:[%s264_s2] ss:$0 sm:$0xff]  ;;  %v190_v17 = vunpack.c.l.bf16 %v189_v13  ;;  %v191_v23 = vunpack.c.h.bf16 %v189_v13 }
   0x8   :  { %v24_v10 = vld [vmem:[#allocation2] sm:$0xff] }
   0x9   :  { %v25_v14 = vld [vmem:[#allocation2 + $0x8] sm:$0xff] }
   0xa   :  { %100 = vmatpush.bf16.msra.mxu0 %v185_v3 }
   0xe   :  { %101 = vmatpush.bf16.msra.mxu0 %v184_v4 }
  0x12   :  { %102 = vmatpush.bf16.msra.mxu0 %v183_v5 }
  0x16   :  { %103 = vmatpush.bf16.msra.mxu0 %v182_v6 }
  0x1a   :  { %104 = vmatpush.bf16.msra.mxu0 %v181_v7 }
  0x1e   :  { %105 = vmatpush.bf16.msra.mxu0 %v180_v8 }
  0x21   :  { %106 = vmatmul.bf16.vlgmr.msra.gmra.mxu0 %v179_v9 }
  0x9e   :  { %v107_v11 = vpop.f32.mrf.mxu0 }
  0x9f   :  { %v112_v12 = vadd.f32 %v107_v11, %v24_v10 }
  0xa1   :  { %115 = vst.msk [vmem:[#allocation2] sm:$0xff] %vm21_vm0, %v112_v12 }
  0xa6   :  { %v109_v16 = vpop.f32.mrf.mxu0 }
  0xa7   :  { %v113_v18 = vadd.f32 %v109_v16, %v25_v14 }
  0xa8   :  { %v120_v19 = vld [vmem:[#allocation2] sm:$0xff] }
  0xa9   :  { %v126_v20 = vadd.f32 %v193_v15, %v120_v19  ;;  %116 = vst.msk [vmem:[#allocation2 + $0x8] sm:$0xff] %vm21_vm0, %v113_v18 }
  0xab   :  { %v132_v21 = vadd.f32 %v190_v17, %v126_v20 }
  0xad   :  { %v134_v22 = vpack.c.bf16 %v132_v21, %v132_v21 }
  0xaf   :  { %137 = vst.msk [vmem:[%s267_s4] sm:$0xf] %vm136_vm1, %v134_v22 }
  0xb0   :  { %v121_v24 = vld [vmem:[#allocation2 + $0x8] sm:$0xff] }
  0xb1   :  { %v127_v25 = vadd.f32 %v193_v15, %v121_v24 }
  0xb3   :  { %v133_v26 = vadd.f32 %v191_v23, %v127_v25 }
  0xb5   :  { %v135_v27 = vpack.c.bf16 %v133_v26, %v133_v26 }
  0xb7   :  { %138 = vst.msk [vmem:[%s267_s4 + $0x4] sm:$0xf] %vm136_vm1, %v135_v27 }

</bundles_post_ra>
